<compile_context>
chip_gen: v5e
topology: v5e:2x2
jax: 0.10.0
libtpu: 0.0.40
codegen_flags: <defaults>
</compile_context>

<pallas_src>
import jax
import jax.numpy as jnp
from jax.experimental import pallas as pl
from jax.experimental.pallas import tpu as pltpu


def _lstm_kernel(x_ref,                       # (Tblk*Bp, D) time-major slab
                 wih1_ref, whh1_ref, b1_ref,  # (D,4H), (H,4H), (1,4H)
                 wih2_ref, whh2_ref, b2_ref,  # (H,4H), (H,4H), (1,4H)
                 h_out_ref,                   # (Bp, H)  last hidden, top layer
                 xg_ref,                      # scratch (Tblk*Bp, 4H)
                 h1all_ref,                   # scratch (Tblk*Bp, H)
                 h1, c1, h2, c2):             # persistent scratch (Bp, H) each
    Bp, H = h1.shape
    Tblk = x_ref.shape[0] // Bp
    blk = pl.program_id(0)
    unroll = min(Tblk, 4)

    @pl.when(blk == 0)
    def _():
        h1[...] = jnp.zeros_like(h1)
        c1[...] = jnp.zeros_like(c1)
        h2[...] = jnp.zeros_like(h2)
        c2[...] = jnp.zeros_like(c2)

    # Loop-invariant recurrent weights (hoisted loads).
    whh1 = whh1_ref[...]
    whh2 = whh2_ref[...]

    def gates_to_hc(gates, c_prev):
        # Gate columns are [i | f | o | g]: one sigmoid over (Bp, 3H) and one
        # tanh over (Bp, H) -- half the transcendental width of full-tile
        # sigmoid + tanh.
        sg = jax.nn.sigmoid(gates[:, :3 * H])
        g = jnp.tanh(gates[:, 3 * H:])
        i = sg[:, 0 * H:1 * H]
        f = sg[:, 1 * H:2 * H]
        o = sg[:, 2 * H:3 * H]
        c_new = f * c_prev + i * g
        h_new = o * jnp.tanh(c_new)
        return h_new, c_new

    # Pass A: layer-1 input projection for the whole time block (big GEMM).
    xg_ref[...] = (jnp.dot(x_ref[...], wih1_ref[...],
                           preferred_element_type=jnp.float32) + b1_ref[...])

    # Pass B: layer-1 recurrence; one (Bp,H)@(H,4H) matmul per step.
    def step1(t, carry):
        base = pl.multiple_of(t * Bp, Bp)
        g1 = xg_ref[pl.ds(base, Bp), :] + jnp.dot(
            h1[...], whh1, preferred_element_type=jnp.float32)
        h1_new, c1_new = gates_to_hc(g1, c1[...])
        h1[...] = h1_new
        c1[...] = c1_new
        h1all_ref[pl.ds(base, Bp), :] = h1_new
        return carry

    jax.lax.fori_loop(0, Tblk, step1, 0, unroll=unroll)

    # Pass C: layer-2 input projection for the whole block (big GEMM); the xg
    # buffer is dead after pass B so it is reused.  Dropout between layers is
    # identity in eval mode.
    xg_ref[...] = (jnp.dot(h1all_ref[...], wih2_ref[...],
                           preferred_element_type=jnp.float32) + b2_ref[...])

    # Pass D: layer-2 recurrence; one (Bp,H)@(H,4H) matmul per step.
    def step2(t, carry):
        base = pl.multiple_of(t * Bp, Bp)
        g2 = xg_ref[pl.ds(base, Bp), :] + jnp.dot(
            h2[...], whh2, preferred_element_type=jnp.float32)
        h2_new, c2_new = gates_to_hc(g2, c2[...])
        h2[...] = h2_new
        c2[...] = c2_new
        return carry

    jax.lax.fori_loop(0, Tblk, step2, 0, unroll=unroll)

    @pl.when(blk == pl.num_programs(0) - 1)
    def _():
        h_out_ref[...] = h2[...]


def _permute_gates_ifgo_to_ifog(w):
    """Permute the last (4H) axis from PyTorch order (i,f,g,o) to (i,f,o,g)."""
    i, f, g, o = jnp.split(w, 4, axis=-1)
    return jnp.concatenate([i, f, o, g], axis=-1)


def _pick_t_block(T, cap=16):
    """Largest divisor of T not exceeding cap."""
    tb = 1
    for d in range(1, min(T, cap) + 1):
        if T % d == 0:
            tb = d
    return tb


def lstm_classifier_forward(x, params, *, t_block=None):
    """x: (B, T, D) float32 -> (B,) float32 (matches PyTorch forward, eval mode)."""
    B, T, D = x.shape
    H = params["whh1"].shape[0]              # whh1 stored as (H, 4H)
    Bp = ((B + 7) // 8) * 8                  # pad batch to the f32 sublane count
    tblk = _pick_t_block(T) if t_block is None else t_block
    assert T % tblk == 0, (T, tblk)
    n_blk = T // tblk

    x_tm = jnp.transpose(x, (1, 0, 2))                     # (T, B, D)
    x_tm = jnp.pad(x_tm, ((0, 0), (0, Bp - B), (0, 0)))    # (T, Bp, D)
    x2 = x_tm.reshape(T * Bp, D)                           # (T*Bp, D), time-major

    # Wrapper-side gate-column permutation -> (i,f,o,g) kernel layout.
    wih1 = _permute_gates_ifgo_to_ifog(params["wih1"])
    whh1 = _permute_gates_ifgo_to_ifog(params["whh1"])
    b1 = _permute_gates_ifgo_to_ifog(params["b1"])
    wih2 = _permute_gates_ifgo_to_ifog(params["wih2"])
    whh2 = _permute_gates_ifgo_to_ifog(params["whh2"])
    b2 = _permute_gates_ifgo_to_ifog(params["b2"])

    # VMEM budget from the actual buffers: double-buffered x block + output,
    # weights (conservatively counted double-buffered), kernel scratch; then
    # 2x headroom, clamped to [32 MiB, 64 MiB] (v7x physical VMEM is 64 MiB).
    f32b = 4
    weight_elems = D * 4 * H + 3 * (H * 4 * H) + 2 * (4 * H)
    scratch_elems = tblk * Bp * 4 * H + tblk * Bp * H + 4 * Bp * H
    io_elems = 2 * (tblk * Bp * D) + 2 * (Bp * H)
    need = f32b * (io_elems + 2 * weight_elems + scratch_elems)
    vmem_limit = int(min(max(2 * need + (4 << 20), 32 << 20), 64 << 20))

    const = lambda shape: pl.BlockSpec(shape, lambda b: tuple(0 for _ in shape))

    h_last = pl.pallas_call(
        _lstm_kernel,
        out_shape=jax.ShapeDtypeStruct((Bp, H), jnp.float32),
        grid=(n_blk,),
        in_specs=[
            pl.BlockSpec((tblk * Bp, D), lambda b: (b, 0)),   # x, one time block
            const((D, 4 * H)),        # W_ih layer 1 (transposed, permuted)
            const((H, 4 * H)),        # W_hh layer 1
            const((1, 4 * H)),        # combined bias layer 1
            const((H, 4 * H)),        # W_ih layer 2
            const((H, 4 * H)),        # W_hh layer 2
            const((1, 4 * H)),        # combined bias layer 2
        ],
        out_specs=const((Bp, H)),
        scratch_shapes=[
            pltpu.VMEM((tblk * Bp, 4 * H), jnp.float32),  # xg: hoisted projections
            pltpu.VMEM((tblk * Bp, H), jnp.float32),      # layer-1 h for the block
            pltpu.VMEM((Bp, H), jnp.float32),             # h1 (persistent carry)
            pltpu.VMEM((Bp, H), jnp.float32),             # c1
            pltpu.VMEM((Bp, H), jnp.float32),             # h2
            pltpu.VMEM((Bp, H), jnp.float32),             # c2
        ],
        compiler_params=pltpu.CompilerParams(
            dimension_semantics=("arbitrary",),           # sequential time blocks
            vmem_limit_bytes=vmem_limit),
    )(x2, wih1, whh1, b1, wih2, whh2, b2)

    # Tiny (B,H)x(H,1) GEMV head stays outside the kernel so the kernel output
    # stays lane-dense instead of a 1-lane-wide masked store.
    logits = h_last[:B] @ params["wfc"] + params["bfc"]      # (B, 1)
    return logits[:, 0]                                       # squeeze(-1)


def init_params(key, input_dim, hidden_dim):
    """Deterministic init matching the PyTorch module's parameter shapes.

    PyTorch stores weight_ih_l{k}: (4H, in), weight_hh_l{k}: (4H, H),
    bias_ih/bias_hh: (4H,), gate order (i,f,g,o).  We keep them pre-transposed
    and with the two biases summed (mathematically identical forward).
    """
    H = hidden_dim
    ks = jax.random.split(key, 10)
    bound = 1.0 / jnp.sqrt(jnp.float32(H))
    u = lambda k, shape: jax.random.uniform(k, shape, jnp.float32, -bound, bound)
    return {
        "wih1": u(ks[0], (input_dim, 4 * H)),
        "whh1": u(ks[1], (H, 4 * H)),
        "b1":   u(ks[2], (1, 4 * H)) + u(ks[3], (1, 4 * H)),
        "wih2": u(ks[4], (H, 4 * H)),
        "whh2": u(ks[5], (H, 4 * H)),
        "b2":   u(ks[6], (1, 4 * H)) + u(ks[7], (1, 4 * H)),
        "wfc":  u(ks[8], (H, 1)),
        "bfc":  u(ks[9], (1, 1)),
    }


def _reference_forward(x, params):
    """Pure-JAX reference (lax.scan), PyTorch (i,f,g,o) gate order."""
    def cell(x_in, h, c, wih, whh, b):
        gates = x_in @ wih + h @ whh + b
        H = h.shape[-1]
        i = jax.nn.sigmoid(gates[:, 0 * H:1 * H])
        f = jax.nn.sigmoid(gates[:, 1 * H:2 * H])
        g = jnp.tanh(gates[:, 2 * H:3 * H])
        o = jax.nn.sigmoid(gates[:, 3 * H:4 * H])
        c_new = f * c + i * g
        return o * jnp.tanh(c_new), c_new

    B, T, D = x.shape
    H = params["whh1"].shape[0]
    zeros = jnp.zeros((B, H), jnp.float32)

    def step(carry, x_t):
        h1, c1, h2, c2 = carry
        h1, c1 = cell(x_t, h1, c1, params["wih1"], params["whh1"], params["b1"])
        h2, c2 = cell(h1, h2, c2, params["wih2"], params["whh2"], params["b2"])
        return (h1, c1, h2, c2), None

    (h1, c1, h2, c2), _ = jax.lax.scan(step, (zeros, zeros, zeros, zeros),
                                       jnp.transpose(x, (1, 0, 2)))
    return (h2 @ params["wfc"] + params["bfc"])[:, 0]


if __name__ == "__main__":
    B, T, D, H = 2, 16, 8, 32

    key = jax.random.PRNGKey(0)
    k_x, k_p = jax.random.split(key)
    x = jax.random.normal(k_x, (B, T, D), jnp.float32)
    params = init_params(k_p, D, H)

    # Tblk=4 -> grid=(4,): exercises the time-blocked pipeline and the
    # persistent h/c carry across grid steps.
    fwd = jax.jit(lambda x, p: lstm_classifier_forward(x, p, t_block=4))
    out = jax.block_until_ready(fwd(x, params))

    ref = jax.block_until_ready(_reference_forward(x, params))
    assert out.shape == (B,)
    assert jnp.allclose(out, ref, atol=2e-5, rtol=2e-5), (out, ref)

    print("KERNEL_OK")
</pallas_src>

<mosaic_0001>
module attributes {stable_mosaic.version = 11 : i64} {
  func.func @_lstm_kernel(%arg0: i32, %arg1: memref<32x8xf32, #tpu.memory_space<vmem>>, %arg2: memref<8x128xf32, #tpu.memory_space<vmem>>, %arg3: memref<32x128xf32, #tpu.memory_space<vmem>>, %arg4: memref<1x128xf32, #tpu.memory_space<vmem>>, %arg5: memref<32x128xf32, #tpu.memory_space<vmem>>, %arg6: memref<32x128xf32, #tpu.memory_space<vmem>>, %arg7: memref<1x128xf32, #tpu.memory_space<vmem>>, %arg8: memref<8x32xf32, #tpu.memory_space<vmem>>, %arg9: memref<32x128xf32, #tpu.memory_space<vmem>>, %arg10: memref<32x32xf32, #tpu.memory_space<vmem>>, %arg11: memref<8x32xf32, #tpu.memory_space<vmem>>, %arg12: memref<8x32xf32, #tpu.memory_space<vmem>>, %arg13: memref<8x32xf32, #tpu.memory_space<vmem>>, %arg14: memref<8x32xf32, #tpu.memory_space<vmem>>) attributes {dimension_semantics = [#tpu.dimension_semantics<arbitrary>], iteration_bounds = array<i64: 4>, scalar_prefetch = 0 : i64, scratch_operands = 6 : i64, tpu.core_type = #tpu.core_type<tc>, window_params = [{transform_indices = @transform_0, window_bounds = array<i64: 32, 8>}, {pipeline_mode = #tpu.pipeline_mode<synchronous>, transform_indices = @transform_1, window_bounds = array<i64: 8, 128>}, {pipeline_mode = #tpu.pipeline_mode<synchronous>, transform_indices = @transform_2, window_bounds = array<i64: 32, 128>}, {pipeline_mode = #tpu.pipeline_mode<synchronous>, transform_indices = @transform_3, window_bounds = array<i64: 1, 128>}, {pipeline_mode = #tpu.pipeline_mode<synchronous>, transform_indices = @transform_4, window_bounds = array<i64: 32, 128>}, {pipeline_mode = #tpu.pipeline_mode<synchronous>, transform_indices = @transform_5, window_bounds = array<i64: 32, 128>}, {pipeline_mode = #tpu.pipeline_mode<synchronous>, transform_indices = @transform_6, window_bounds = array<i64: 1, 128>}, {pipeline_mode = #tpu.pipeline_mode<synchronous>, transform_indices = @transform_7, window_bounds = array<i64: 8, 32>}]} {
    %c0_i32 = arith.constant 0 : i32
    %0 = arith.cmpi eq, %arg0, %c0_i32 : i32
    %1 = arith.extui %0 : i1 to i32
    %c0_i32_0 = arith.constant 0 : i32
    %2 = arith.cmpi ne, %1, %c0_i32_0 : i32
    scf.if %2 {
      %cst_128 = arith.constant 0.000000e+00 : f32
      %238 = vector.broadcast %cst_128 : f32 to vector<8x32xf32>
      %c0_129 = arith.constant 0 : index
      %c0_130 = arith.constant 0 : index
      %239 = vector.load %arg11[%c0_129, %c0_130] : memref<8x32xf32, #tpu.memory_space<vmem>>, vector<8x32xf32>
      tpu.vector_store %arg11[%c0_129, %c0_130], %238 {strides = array<i32>} : memref<8x32xf32, #tpu.memory_space<vmem>>, vector<8x32xf32>,
      %cst_131 = arith.constant 0.000000e+00 : f32
      %240 = vector.broadcast %cst_131 : f32 to vector<8x32xf32>
      %c0_132 = arith.constant 0 : index
      %c0_133 = arith.constant 0 : index
      %241 = vector.load %arg12[%c0_132, %c0_133] : memref<8x32xf32, #tpu.memory_space<vmem>>, vector<8x32xf32>
      tpu.vector_store %arg12[%c0_132, %c0_133], %240 {strides = array<i32>} : memref<8x32xf32, #tpu.memory_space<vmem>>, vector<8x32xf32>,
      %cst_134 = arith.constant 0.000000e+00 : f32
      %242 = vector.broadcast %cst_134 : f32 to vector<8x32xf32>
      %c0_135 = arith.constant 0 : index
      %c0_136 = arith.constant 0 : index
      %243 = vector.load %arg13[%c0_135, %c0_136] : memref<8x32xf32, #tpu.memory_space<vmem>>, vector<8x32xf32>
      tpu.vector_store %arg13[%c0_135, %c0_136], %242 {strides = array<i32>} : memref<8x32xf32, #tpu.memory_space<vmem>>, vector<8x32xf32>,
      %cst_137 = arith.constant 0.000000e+00 : f32
      %244 = vector.broadcast %cst_137 : f32 to vector<8x32xf32>
      %c0_138 = arith.constant 0 : index
      %c0_139 = arith.constant 0 : index
      %245 = vector.load %arg14[%c0_138, %c0_139] : memref<8x32xf32, #tpu.memory_space<vmem>>, vector<8x32xf32>
      tpu.vector_store %arg14[%c0_138, %c0_139], %244 {strides = array<i32>} : memref<8x32xf32, #tpu.memory_space<vmem>>, vector<8x32xf32>,
    } else {
    }
    %c0 = arith.constant 0 : index
    %c0_1 = arith.constant 0 : index
    %3 = vector.load %arg3[%c0, %c0_1] : memref<32x128xf32, #tpu.memory_space<vmem>>, vector<32x128xf32>
    %c0_2 = arith.constant 0 : index
    %c0_3 = arith.constant 0 : index
    %4 = vector.load %arg6[%c0_2, %c0_3] : memref<32x128xf32, #tpu.memory_space<vmem>>, vector<32x128xf32>
    %c0_4 = arith.constant 0 : index
    %c0_5 = arith.constant 0 : index
    %5 = vector.load %arg1[%c0_4, %c0_5] : memref<32x8xf32, #tpu.memory_space<vmem>>, vector<32x8xf32>
    %c0_6 = arith.constant 0 : index
    %c0_7 = arith.constant 0 : index
    %6 = vector.load %arg2[%c0_6, %c0_7] : memref<8x128xf32, #tpu.memory_space<vmem>>, vector<8x128xf32>
    %cst = arith.constant dense<0.000000e+00> : vector<32x128xf32>
    %7 = tpu.matmul %5, %6, %cst {dimension_numbers = #tpu.dot_dimension_numbers<[1], [0], [0], [1], [0, 0, 1, 1], [], []>} : vector<32x8xf32>, vector<8x128xf32>, vector<32x128xf32> -> vector<32x128xf32>
    %c0_8 = arith.constant 0 : index
    %c0_9 = arith.constant 0 : index
    %8 = vector.load %arg4[%c0_8, %c0_9] : memref<1x128xf32, #tpu.memory_space<vmem>>, vector<1x128xf32>
    %9 = vector.broadcast %8 : vector<1x128xf32> to vector<32x128xf32>
    %10 = arith.addf %7, %9 : vector<32x128xf32>
    %c0_10 = arith.constant 0 : index
    %c0_11 = arith.constant 0 : index
    %11 = vector.load %arg9[%c0_10, %c0_11] : memref<32x128xf32, #tpu.memory_space<vmem>>, vector<32x128xf32>
    tpu.vector_store %arg9[%c0_10, %c0_11], %10 {strides = array<i32>} : memref<32x128xf32, #tpu.memory_space<vmem>>, vector<32x128xf32>,
    %c0_i32_12 = arith.constant 0 : i32
    %c8_i32 = arith.constant 8 : i32
    %12 = arith.muli %c0_i32_12, %c8_i32 : i32
    %13 = tpu.assume_multiple %12, 8 : i32
    %14 = arith.index_cast %13 : i32 to index
    %c0_13 = arith.constant 0 : index
    %15 = vector.load %arg9[%14, %c0_13] : memref<32x128xf32, #tpu.memory_space<vmem>>, vector<8x128xf32>
    %c0_14 = arith.constant 0 : index
    %c0_15 = arith.constant 0 : index
    %16 = vector.load %arg11[%c0_14, %c0_15] : memref<8x32xf32, #tpu.memory_space<vmem>>, vector<8x32xf32>
    %cst_16 = arith.constant dense<0.000000e+00> : vector<8x128xf32>
    %17 = tpu.matmul %16, %3, %cst_16 {dimension_numbers = #tpu.dot_dimension_numbers<[1], [0], [0], [1], [0, 0, 1, 1], [], []>} : vector<8x32xf32>, vector<32x128xf32>, vector<8x128xf32> -> vector<8x128xf32>
    %18 = arith.addf %15, %17 : vector<8x128xf32>
    %c0_17 = arith.constant 0 : index
    %c0_18 = arith.constant 0 : index
    %19 = vector.load %arg12[%c0_17, %c0_18] : memref<8x32xf32, #tpu.memory_space<vmem>>, vector<8x32xf32>
    %20 = vector.extract_strided_slice %18 {offsets = [0, 0], sizes = [8, 96], strides = [1, 1]} : vector<8x128xf32> to vector<8x96xf32>
    %21 = arith.negf %20 : vector<8x96xf32>
    %22 = math.exp %21 : vector<8x96xf32>
    %cst_19 = arith.constant 1.000000e+00 : f32
    %23 = vector.broadcast %cst_19 : f32 to vector<8x96xf32>
    %24 = arith.addf %23, %22 : vector<8x96xf32>
    %25 = arith.divf %23, %24 : vector<8x96xf32>
    %26 = vector.extract_strided_slice %18 {offsets = [0, 96], sizes = [8, 32], strides = [1, 1]} : vector<8x128xf32> to vector<8x32xf32>
    %27 = math.tanh %26 : vector<8x32xf32>
    %28 = vector.extract_strided_slice %25 {offsets = [0, 0], sizes = [8, 32], strides = [1, 1]} : vector<8x96xf32> to vector<8x32xf32>
    %29 = vector.extract_strided_slice %25 {offsets = [0, 32], sizes = [8, 32], strides = [1, 1]} : vector<8x96xf32> to vector<8x32xf32>
    %30 = vector.extract_strided_slice %25 {offsets = [0, 64], sizes = [8, 32], strides = [1, 1]} : vector<8x96xf32> to vector<8x32xf32>
    %31 = arith.mulf %29, %19 : vector<8x32xf32>
    %32 = arith.mulf %28, %27 : vector<8x32xf32>
    %33 = arith.addf %31, %32 : vector<8x32xf32>
    %34 = math.tanh %33 : vector<8x32xf32>
    %35 = arith.mulf %30, %34 : vector<8x32xf32>
    %c0_20 = arith.constant 0 : index
    %c0_21 = arith.constant 0 : index
    %36 = vector.load %arg11[%c0_20, %c0_21] : memref<8x32xf32, #tpu.memory_space<vmem>>, vector<8x32xf32>
    tpu.vector_store %arg11[%c0_20, %c0_21], %35 {strides = array<i32>} : memref<8x32xf32, #tpu.memory_space<vmem>>, vector<8x32xf32>,
    %c0_22 = arith.constant 0 : index
    %c0_23 = arith.constant 0 : index
    %37 = vector.load %arg12[%c0_22, %c0_23] : memref<8x32xf32, #tpu.memory_space<vmem>>, vector<8x32xf32>
    tpu.vector_store %arg12[%c0_22, %c0_23], %33 {strides = array<i32>} : memref<8x32xf32, #tpu.memory_space<vmem>>, vector<8x32xf32>,
    %38 = arith.index_cast %13 : i32 to index
    %c0_24 = arith.constant 0 : index
    %39 = vector.load %arg10[%38, %c0_24] : memref<32x32xf32, #tpu.memory_space<vmem>>, vector<8x32xf32>
    tpu.vector_store %arg10[%38, %c0_24], %35 {strides = array<i32>} : memref<32x32xf32, #tpu.memory_space<vmem>>, vector<8x32xf32>,
    %c1_i32 = arith.constant 1 : i32
    %c8_i32_25 = arith.constant 8 : i32
    %40 = arith.muli %c1_i32, %c8_i32_25 : i32
    %41 = tpu.assume_multiple %40, 8 : i32
    %42 = arith.index_cast %41 : i32 to index
    %c0_26 = arith.constant 0 : index
    %43 = vector.load %arg9[%42, %c0_26] : memref<32x128xf32, #tpu.memory_space<vmem>>, vector<8x128xf32>
    %c0_27 = arith.constant 0 : index
    %c0_28 = arith.constant 0 : index
    %44 = vector.load %arg11[%c0_27, %c0_28] : memref<8x32xf32, #tpu.memory_space<vmem>>, vector<8x32xf32>
    %cst_29 = arith.constant dense<0.000000e+00> : vector<8x128xf32>
    %45 = tpu.matmul %44, %3, %cst_29 {dimension_numbers = #tpu.dot_dimension_numbers<[1], [0], [0], [1], [0, 0, 1, 1], [], []>} : vector<8x32xf32>, vector<32x128xf32>, vector<8x128xf32> -> vector<8x128xf32>
    %46 = arith.addf %43, %45 : vector<8x128xf32>
    %c0_30 = arith.constant 0 : index
    %c0_31 = arith.constant 0 : index
    %47 = vector.load %arg12[%c0_30, %c0_31] : memref<8x32xf32, #tpu.memory_space<vmem>>, vector<8x32xf32>
    %48 = vector.extract_strided_slice %46 {offsets = [0, 0], sizes = [8, 96], strides = [1, 1]} : vector<8x128xf32> to vector<8x96xf32>
    %49 = arith.negf %48 : vector<8x96xf32>
    %50 = math.exp %49 : vector<8x96xf32>
    %cst_32 = arith.constant 1.000000e+00 : f32
    %51 = vector.broadcast %cst_32 : f32 to vector<8x96xf32>
    %52 = arith.addf %51, %50 : vector<8x96xf32>
    %53 = arith.divf %51, %52 : vector<8x96xf32>
    %54 = vector.extract_strided_slice %46 {offsets = [0, 96], sizes = [8, 32], strides = [1, 1]} : vector<8x128xf32> to vector<8x32xf32>
    %55 = math.tanh %54 : vector<8x32xf32>
    %56 = vector.extract_strided_slice %53 {offsets = [0, 0], sizes = [8, 32], strides = [1, 1]} : vector<8x96xf32> to vector<8x32xf32>
    %57 = vector.extract_strided_slice %53 {offsets = [0, 32], sizes = [8, 32], strides = [1, 1]} : vector<8x96xf32> to vector<8x32xf32>
    %58 = vector.extract_strided_slice %53 {offsets = [0, 64], sizes = [8, 32], strides = [1, 1]} : vector<8x96xf32> to vector<8x32xf32>
    %59 = arith.mulf %57, %47 : vector<8x32xf32>
    %60 = arith.mulf %56, %55 : vector<8x32xf32>
    %61 = arith.addf %59, %60 : vector<8x32xf32>
    %62 = math.tanh %61 : vector<8x32xf32>
    %63 = arith.mulf %58, %62 : vector<8x32xf32>
    %c0_33 = arith.constant 0 : index
    %c0_34 = arith.constant 0 : index
    %64 = vector.load %arg11[%c0_33, %c0_34] : memref<8x32xf32, #tpu.memory_space<vmem>>, vector<8x32xf32>
    tpu.vector_store %arg11[%c0_33, %c0_34], %63 {strides = array<i32>} : memref<8x32xf32, #tpu.memory_space<vmem>>, vector<8x32xf32>,
    %c0_35 = arith.constant 0 : index
    %c0_36 = arith.constant 0 : index
    %65 = vector.load %arg12[%c0_35, %c0_36] : memref<8x32xf32, #tpu.memory_space<vmem>>, vector<8x32xf32>
    tpu.vector_store %arg12[%c0_35, %c0_36], %61 {strides = array<i32>} : memref<8x32xf32, #tpu.memory_space<vmem>>, vector<8x32xf32>,
    %66 = arith.index_cast %41 : i32 to index
    %c0_37 = arith.constant 0 : index
    %67 = vector.load %arg10[%66, %c0_37] : memref<32x32xf32, #tpu.memory_space<vmem>>, vector<8x32xf32>
    tpu.vector_store %arg10[%66, %c0_37], %63 {strides = array<i32>} : memref<32x32xf32, #tpu.memory_space<vmem>>, vector<8x32xf32>,
    %c2_i32 = arith.constant 2 : i32
    %c8_i32_38 = arith.constant 8 : i32
    %68 = arith.muli %c2_i32, %c8_i32_38 : i32
    %69 = tpu.assume_multiple %68, 8 : i32
    %70 = arith.index_cast %69 : i32 to index
    %c0_39 = arith.constant 0 : index
    %71 = vector.load %arg9[%70, %c0_39] : memref<32x128xf32, #tpu.memory_space<vmem>>, vector<8x128xf32>
    %c0_40 = arith.constant 0 : index
    %c0_41 = arith.constant 0 : index
    %72 = vector.load %arg11[%c0_40, %c0_41] : memref<8x32xf32, #tpu.memory_space<vmem>>, vector<8x32xf32>
    %cst_42 = arith.constant dense<0.000000e+00> : vector<8x128xf32>
    %73 = tpu.matmul %72, %3, %cst_42 {dimension_numbers = #tpu.dot_dimension_numbers<[1], [0], [0], [1], [0, 0, 1, 1], [], []>} : vector<8x32xf32>, vector<32x128xf32>, vector<8x128xf32> -> vector<8x128xf32>
    %74 = arith.addf %71, %73 : vector<8x128xf32>
    %c0_43 = arith.constant 0 : index
    %c0_44 = arith.constant 0 : index
    %75 = vector.load %arg12[%c0_43, %c0_44] : memref<8x32xf32, #tpu.memory_space<vmem>>, vector<8x32xf32>
    %76 = vector.extract_strided_slice %74 {offsets = [0, 0], sizes = [8, 96], strides = [1, 1]} : vector<8x128xf32> to vector<8x96xf32>
    %77 = arith.negf %76 : vector<8x96xf32>
    %78 = math.exp %77 : vector<8x96xf32>
    %cst_45 = arith.constant 1.000000e+00 : f32
    %79 = vector.broadcast %cst_45 : f32 to vector<8x96xf32>
    %80 = arith.addf %79, %78 : vector<8x96xf32>
    %81 = arith.divf %79, %80 : vector<8x96xf32>
    %82 = vector.extract_strided_slice %74 {offsets = [0, 96], sizes = [8, 32], strides = [1, 1]} : vector<8x128xf32> to vector<8x32xf32>
    %83 = math.tanh %82 : vector<8x32xf32>
    %84 = vector.extract_strided_slice %81 {offsets = [0, 0], sizes = [8, 32], strides = [1, 1]} : vector<8x96xf32> to vector<8x32xf32>
    %85 = vector.extract_strided_slice %81 {offsets = [0, 32], sizes = [8, 32], strides = [1, 1]} : vector<8x96xf32> to vector<8x32xf32>
    %86 = vector.extract_strided_slice %81 {offsets = [0, 64], sizes = [8, 32], strides = [1, 1]} : vector<8x96xf32> to vector<8x32xf32>
    %87 = arith.mulf %85, %75 : vector<8x32xf32>
    %88 = arith.mulf %84, %83 : vector<8x32xf32>
    %89 = arith.addf %87, %88 : vector<8x32xf32>
    %90 = math.tanh %89 : vector<8x32xf32>
    %91 = arith.mulf %86, %90 : vector<8x32xf32>
    %c0_46 = arith.constant 0 : index
    %c0_47 = arith.constant 0 : index
    %92 = vector.load %arg11[%c0_46, %c0_47] : memref<8x32xf32, #tpu.memory_space<vmem>>, vector<8x32xf32>
    tpu.vector_store %arg11[%c0_46, %c0_47], %91 {strides = array<i32>} : memref<8x32xf32, #tpu.memory_space<vmem>>, vector<8x32xf32>,
    %c0_48 = arith.constant 0 : index
    %c0_49 = arith.constant 0 : index
    %93 = vector.load %arg12[%c0_48, %c0_49] : memref<8x32xf32, #tpu.memory_space<vmem>>, vector<8x32xf32>
    tpu.vector_store %arg12[%c0_48, %c0_49], %89 {strides = array<i32>} : memref<8x32xf32, #tpu.memory_space<vmem>>, vector<8x32xf32>,
    %94 = arith.index_cast %69 : i32 to index
    %c0_50 = arith.constant 0 : index
    %95 = vector.load %arg10[%94, %c0_50] : memref<32x32xf32, #tpu.memory_space<vmem>>, vector<8x32xf32>
    tpu.vector_store %arg10[%94, %c0_50], %91 {strides = array<i32>} : memref<32x32xf32, #tpu.memory_space<vmem>>, vector<8x32xf32>,
    %c3_i32 = arith.constant 3 : i32
    %c8_i32_51 = arith.constant 8 : i32
    %96 = arith.muli %c3_i32, %c8_i32_51 : i32
    %97 = tpu.assume_multiple %96, 8 : i32
    %98 = arith.index_cast %97 : i32 to index
    %c0_52 = arith.constant 0 : index
    %99 = vector.load %arg9[%98, %c0_52] : memref<32x128xf32, #tpu.memory_space<vmem>>, vector<8x128xf32>
    %c0_53 = arith.constant 0 : index
    %c0_54 = arith.constant 0 : index
    %100 = vector.load %arg11[%c0_53, %c0_54] : memref<8x32xf32, #tpu.memory_space<vmem>>, vector<8x32xf32>
    %cst_55 = arith.constant dense<0.000000e+00> : vector<8x128xf32>
    %101 = tpu.matmul %100, %3, %cst_55 {dimension_numbers = #tpu.dot_dimension_numbers<[1], [0], [0], [1], [0, 0, 1, 1], [], []>} : vector<8x32xf32>, vector<32x128xf32>, vector<8x128xf32> -> vector<8x128xf32>
    %102 = arith.addf %99, %101 : vector<8x128xf32>
    %c0_56 = arith.constant 0 : index
    %c0_57 = arith.constant 0 : index
    %103 = vector.load %arg12[%c0_56, %c0_57] : memref<8x32xf32, #tpu.memory_space<vmem>>, vector<8x32xf32>
    %104 = vector.extract_strided_slice %102 {offsets = [0, 0], sizes = [8, 96], strides = [1, 1]} : vector<8x128xf32> to vector<8x96xf32>
    %105 = arith.negf %104 : vector<8x96xf32>
    %106 = math.exp %105 : vector<8x96xf32>
    %cst_58 = arith.constant 1.000000e+00 : f32
    %107 = vector.broadcast %cst_58 : f32 to vector<8x96xf32>
    %108 = arith.addf %107, %106 : vector<8x96xf32>
    %109 = arith.divf %107, %108 : vector<8x96xf32>
    %110 = vector.extract_strided_slice %102 {offsets = [0, 96], sizes = [8, 32], strides = [1, 1]} : vector<8x128xf32> to vector<8x32xf32>
    %111 = math.tanh %110 : vector<8x32xf32>
    %112 = vector.extract_strided_slice %109 {offsets = [0, 0], sizes = [8, 32], strides = [1, 1]} : vector<8x96xf32> to vector<8x32xf32>
    %113 = vector.extract_strided_slice %109 {offsets = [0, 32], sizes = [8, 32], strides = [1, 1]} : vector<8x96xf32> to vector<8x32xf32>
    %114 = vector.extract_strided_slice %109 {offsets = [0, 64], sizes = [8, 32], strides = [1, 1]} : vector<8x96xf32> to vector<8x32xf32>
    %115 = arith.mulf %113, %103 : vector<8x32xf32>
    %116 = arith.mulf %112, %111 : vector<8x32xf32>
    %117 = arith.addf %115, %116 : vector<8x32xf32>
    %118 = math.tanh %117 : vector<8x32xf32>
    %119 = arith.mulf %114, %118 : vector<8x32xf32>
    %c0_59 = arith.constant 0 : index
    %c0_60 = arith.constant 0 : index
    %120 = vector.load %arg11[%c0_59, %c0_60] : memref<8x32xf32, #tpu.memory_space<vmem>>, vector<8x32xf32>
    tpu.vector_store %arg11[%c0_59, %c0_60], %119 {strides = array<i32>} : memref<8x32xf32, #tpu.memory_space<vmem>>, vector<8x32xf32>,
    %c0_61 = arith.constant 0 : index
    %c0_62 = arith.constant 0 : index
    %121 = vector.load %arg12[%c0_61, %c0_62] : memref<8x32xf32, #tpu.memory_space<vmem>>, vector<8x32xf32>
    tpu.vector_store %arg12[%c0_61, %c0_62], %117 {strides = array<i32>} : memref<8x32xf32, #tpu.memory_space<vmem>>, vector<8x32xf32>,
    %122 = arith.index_cast %97 : i32 to index
    %c0_63 = arith.constant 0 : index
    %123 = vector.load %arg10[%122, %c0_63] : memref<32x32xf32, #tpu.memory_space<vmem>>, vector<8x32xf32>
    tpu.vector_store %arg10[%122, %c0_63], %119 {strides = array<i32>} : memref<32x32xf32, #tpu.memory_space<vmem>>, vector<8x32xf32>,
    %c4_i32 = arith.constant 4 : i32
    %c0_64 = arith.constant 0 : index
    %c0_65 = arith.constant 0 : index
    %124 = vector.load %arg10[%c0_64, %c0_65] : memref<32x32xf32, #tpu.memory_space<vmem>>, vector<32x32xf32>
    %c0_66 = arith.constant 0 : index
    %c0_67 = arith.constant 0 : index
    %125 = vector.load %arg5[%c0_66, %c0_67] : memref<32x128xf32, #tpu.memory_space<vmem>>, vector<32x128xf32>
    %cst_68 = arith.constant dense<0.000000e+00> : vector<32x128xf32>
    %126 = tpu.matmul %124, %125, %cst_68 {dimension_numbers = #tpu.dot_dimension_numbers<[1], [0], [0], [1], [0, 0, 1, 1], [], []>} : vector<32x32xf32>, vector<32x128xf32>, vector<32x128xf32> -> vector<32x128xf32>
    %c0_69 = arith.constant 0 : index
    %c0_70 = arith.constant 0 : index
    %127 = vector.load %arg7[%c0_69, %c0_70] : memref<1x128xf32, #tpu.memory_space<vmem>>, vector<1x128xf32>
    %128 = vector.broadcast %127 : vector<1x128xf32> to vector<32x128xf32>
    %129 = arith.addf %126, %128 : vector<32x128xf32>
    %c0_71 = arith.constant 0 : index
    %c0_72 = arith.constant 0 : index
    %130 = vector.load %arg9[%c0_71, %c0_72] : memref<32x128xf32, #tpu.memory_space<vmem>>, vector<32x128xf32>
    tpu.vector_store %arg9[%c0_71, %c0_72], %129 {strides = array<i32>} : memref<32x128xf32, #tpu.memory_space<vmem>>, vector<32x128xf32>,
    %c0_i32_73 = arith.constant 0 : i32
    %c8_i32_74 = arith.constant 8 : i32
    %131 = arith.muli %c0_i32_73, %c8_i32_74 : i32
    %132 = tpu.assume_multiple %131, 8 : i32
    %133 = arith.index_cast %132 : i32 to index
    %c0_75 = arith.constant 0 : index
    %134 = vector.load %arg9[%133, %c0_75] : memref<32x128xf32, #tpu.memory_space<vmem>>, vector<8x128xf32>
    %c0_76 = arith.constant 0 : index
    %c0_77 = arith.constant 0 : index
    %135 = vector.load %arg13[%c0_76, %c0_77] : memref<8x32xf32, #tpu.memory_space<vmem>>, vector<8x32xf32>
    %cst_78 = arith.constant dense<0.000000e+00> : vector<8x128xf32>
    %136 = tpu.matmul %135, %4, %cst_78 {dimension_numbers = #tpu.dot_dimension_numbers<[1], [0], [0], [1], [0, 0, 1, 1], [], []>} : vector<8x32xf32>, vector<32x128xf32>, vector<8x128xf32> -> vector<8x128xf32>
    %137 = arith.addf %134, %136 : vector<8x128xf32>
    %c0_79 = arith.constant 0 : index
    %c0_80 = arith.constant 0 : index
    %138 = vector.load %arg14[%c0_79, %c0_80] : memref<8x32xf32, #tpu.memory_space<vmem>>, vector<8x32xf32>
    %139 = vector.extract_strided_slice %137 {offsets = [0, 0], sizes = [8, 96], strides = [1, 1]} : vector<8x128xf32> to vector<8x96xf32>
    %140 = arith.negf %139 : vector<8x96xf32>
    %141 = math.exp %140 : vector<8x96xf32>
    %cst_81 = arith.constant 1.000000e+00 : f32
    %142 = vector.broadcast %cst_81 : f32 to vector<8x96xf32>
    %143 = arith.addf %142, %141 : vector<8x96xf32>
    %144 = arith.divf %142, %143 : vector<8x96xf32>
    %145 = vector.extract_strided_slice %137 {offsets = [0, 96], sizes = [8, 32], strides = [1, 1]} : vector<8x128xf32> to vector<8x32xf32>
    %146 = math.tanh %145 : vector<8x32xf32>
    %147 = vector.extract_strided_slice %144 {offsets = [0, 0], sizes = [8, 32], strides = [1, 1]} : vector<8x96xf32> to vector<8x32xf32>
    %148 = vector.extract_strided_slice %144 {offsets = [0, 32], sizes = [8, 32], strides = [1, 1]} : vector<8x96xf32> to vector<8x32xf32>
    %149 = vector.extract_strided_slice %144 {offsets = [0, 64], sizes = [8, 32], strides = [1, 1]} : vector<8x96xf32> to vector<8x32xf32>
    %150 = arith.mulf %148, %138 : vector<8x32xf32>
    %151 = arith.mulf %147, %146 : vector<8x32xf32>
    %152 = arith.addf %150, %151 : vector<8x32xf32>
    %153 = math.tanh %152 : vector<8x32xf32>
    %154 = arith.mulf %149, %153 : vector<8x32xf32>
    %c0_82 = arith.constant 0 : index
    %c0_83 = arith.constant 0 : index
    %155 = vector.load %arg13[%c0_82, %c0_83] : memref<8x32xf32, #tpu.memory_space<vmem>>, vector<8x32xf32>
    tpu.vector_store %arg13[%c0_82, %c0_83], %154 {strides = array<i32>} : memref<8x32xf32, #tpu.memory_space<vmem>>, vector<8x32xf32>,
    %c0_84 = arith.constant 0 : index
    %c0_85 = arith.constant 0 : index
    %156 = vector.load %arg14[%c0_84, %c0_85] : memref<8x32xf32, #tpu.memory_space<vmem>>, vector<8x32xf32>
    tpu.vector_store %arg14[%c0_84, %c0_85], %152 {strides = array<i32>} : memref<8x32xf32, #tpu.memory_space<vmem>>, vector<8x32xf32>,
    %c1_i32_86 = arith.constant 1 : i32
    %c8_i32_87 = arith.constant 8 : i32
    %157 = arith.muli %c1_i32_86, %c8_i32_87 : i32
    %158 = tpu.assume_multiple %157, 8 : i32
    %159 = arith.index_cast %158 : i32 to index
    %c0_88 = arith.constant 0 : index
    %160 = vector.load %arg9[%159, %c0_88] : memref<32x128xf32, #tpu.memory_space<vmem>>, vector<8x128xf32>
    %c0_89 = arith.constant 0 : index
    %c0_90 = arith.constant 0 : index
    %161 = vector.load %arg13[%c0_89, %c0_90] : memref<8x32xf32, #tpu.memory_space<vmem>>, vector<8x32xf32>
    %cst_91 = arith.constant dense<0.000000e+00> : vector<8x128xf32>
    %162 = tpu.matmul %161, %4, %cst_91 {dimension_numbers = #tpu.dot_dimension_numbers<[1], [0], [0], [1], [0, 0, 1, 1], [], []>} : vector<8x32xf32>, vector<32x128xf32>, vector<8x128xf32> -> vector<8x128xf32>
    %163 = arith.addf %160, %162 : vector<8x128xf32>
    %c0_92 = arith.constant 0 : index
    %c0_93 = arith.constant 0 : index
    %164 = vector.load %arg14[%c0_92, %c0_93] : memref<8x32xf32, #tpu.memory_space<vmem>>, vector<8x32xf32>
    %165 = vector.extract_strided_slice %163 {offsets = [0, 0], sizes = [8, 96], strides = [1, 1]} : vector<8x128xf32> to vector<8x96xf32>
    %166 = arith.negf %165 : vector<8x96xf32>
    %167 = math.exp %166 : vector<8x96xf32>
    %cst_94 = arith.constant 1.000000e+00 : f32
    %168 = vector.broadcast %cst_94 : f32 to vector<8x96xf32>
    %169 = arith.addf %168, %167 : vector<8x96xf32>
    %170 = arith.divf %168, %169 : vector<8x96xf32>
    %171 = vector.extract_strided_slice %163 {offsets = [0, 96], sizes = [8, 32], strides = [1, 1]} : vector<8x128xf32> to vector<8x32xf32>
    %172 = math.tanh %171 : vector<8x32xf32>
    %173 = vector.extract_strided_slice %170 {offsets = [0, 0], sizes = [8, 32], strides = [1, 1]} : vector<8x96xf32> to vector<8x32xf32>
    %174 = vector.extract_strided_slice %170 {offsets = [0, 32], sizes = [8, 32], strides = [1, 1]} : vector<8x96xf32> to vector<8x32xf32>
    %175 = vector.extract_strided_slice %170 {offsets = [0, 64], sizes = [8, 32], strides = [1, 1]} : vector<8x96xf32> to vector<8x32xf32>
    %176 = arith.mulf %174, %164 : vector<8x32xf32>
    %177 = arith.mulf %173, %172 : vector<8x32xf32>
    %178 = arith.addf %176, %177 : vector<8x32xf32>
    %179 = math.tanh %178 : vector<8x32xf32>
    %180 = arith.mulf %175, %179 : vector<8x32xf32>
    %c0_95 = arith.constant 0 : index
    %c0_96 = arith.constant 0 : index
    %181 = vector.load %arg13[%c0_95, %c0_96] : memref<8x32xf32, #tpu.memory_space<vmem>>, vector<8x32xf32>
    tpu.vector_store %arg13[%c0_95, %c0_96], %180 {strides = array<i32>} : memref<8x32xf32, #tpu.memory_space<vmem>>, vector<8x32xf32>,
    %c0_97 = arith.constant 0 : index
    %c0_98 = arith.constant 0 : index
    %182 = vector.load %arg14[%c0_97, %c0_98] : memref<8x32xf32, #tpu.memory_space<vmem>>, vector<8x32xf32>
    tpu.vector_store %arg14[%c0_97, %c0_98], %178 {strides = array<i32>} : memref<8x32xf32, #tpu.memory_space<vmem>>, vector<8x32xf32>,
    %c2_i32_99 = arith.constant 2 : i32
    %c8_i32_100 = arith.constant 8 : i32
    %183 = arith.muli %c2_i32_99, %c8_i32_100 : i32
    %184 = tpu.assume_multiple %183, 8 : i32
    %185 = arith.index_cast %184 : i32 to index
    %c0_101 = arith.constant 0 : index
    %186 = vector.load %arg9[%185, %c0_101] : memref<32x128xf32, #tpu.memory_space<vmem>>, vector<8x128xf32>
    %c0_102 = arith.constant 0 : index
    %c0_103 = arith.constant 0 : index
    %187 = vector.load %arg13[%c0_102, %c0_103] : memref<8x32xf32, #tpu.memory_space<vmem>>, vector<8x32xf32>
    %cst_104 = arith.constant dense<0.000000e+00> : vector<8x128xf32>
    %188 = tpu.matmul %187, %4, %cst_104 {dimension_numbers = #tpu.dot_dimension_numbers<[1], [0], [0], [1], [0, 0, 1, 1], [], []>} : vector<8x32xf32>, vector<32x128xf32>, vector<8x128xf32> -> vector<8x128xf32>
    %189 = arith.addf %186, %188 : vector<8x128xf32>
    %c0_105 = arith.constant 0 : index
    %c0_106 = arith.constant 0 : index
    %190 = vector.load %arg14[%c0_105, %c0_106] : memref<8x32xf32, #tpu.memory_space<vmem>>, vector<8x32xf32>
    %191 = vector.extract_strided_slice %189 {offsets = [0, 0], sizes = [8, 96], strides = [1, 1]} : vector<8x128xf32> to vector<8x96xf32>
    %192 = arith.negf %191 : vector<8x96xf32>
    %193 = math.exp %192 : vector<8x96xf32>
    %cst_107 = arith.constant 1.000000e+00 : f32
    %194 = vector.broadcast %cst_107 : f32 to vector<8x96xf32>
    %195 = arith.addf %194, %193 : vector<8x96xf32>
    %196 = arith.divf %194, %195 : vector<8x96xf32>
    %197 = vector.extract_strided_slice %189 {offsets = [0, 96], sizes = [8, 32], strides = [1, 1]} : vector<8x128xf32> to vector<8x32xf32>
    %198 = math.tanh %197 : vector<8x32xf32>
    %199 = vector.extract_strided_slice %196 {offsets = [0, 0], sizes = [8, 32], strides = [1, 1]} : vector<8x96xf32> to vector<8x32xf32>
    %200 = vector.extract_strided_slice %196 {offsets = [0, 32], sizes = [8, 32], strides = [1, 1]} : vector<8x96xf32> to vector<8x32xf32>
    %201 = vector.extract_strided_slice %196 {offsets = [0, 64], sizes = [8, 32], strides = [1, 1]} : vector<8x96xf32> to vector<8x32xf32>
    %202 = arith.mulf %200, %190 : vector<8x32xf32>
    %203 = arith.mulf %199, %198 : vector<8x32xf32>
    %204 = arith.addf %202, %203 : vector<8x32xf32>
    %205 = math.tanh %204 : vector<8x32xf32>
    %206 = arith.mulf %201, %205 : vector<8x32xf32>
    %c0_108 = arith.constant 0 : index
    %c0_109 = arith.constant 0 : index
    %207 = vector.load %arg13[%c0_108, %c0_109] : memref<8x32xf32, #tpu.memory_space<vmem>>, vector<8x32xf32>
    tpu.vector_store %arg13[%c0_108, %c0_109], %206 {strides = array<i32>} : memref<8x32xf32, #tpu.memory_space<vmem>>, vector<8x32xf32>,
    %c0_110 = arith.constant 0 : index
    %c0_111 = arith.constant 0 : index
    %208 = vector.load %arg14[%c0_110, %c0_111] : memref<8x32xf32, #tpu.memory_space<vmem>>, vector<8x32xf32>
    tpu.vector_store %arg14[%c0_110, %c0_111], %204 {strides = array<i32>} : memref<8x32xf32, #tpu.memory_space<vmem>>, vector<8x32xf32>,
    %c3_i32_112 = arith.constant 3 : i32
    %c8_i32_113 = arith.constant 8 : i32
    %209 = arith.muli %c3_i32_112, %c8_i32_113 : i32
    %210 = tpu.assume_multiple %209, 8 : i32
    %211 = arith.index_cast %210 : i32 to index
    %c0_114 = arith.constant 0 : index
    %212 = vector.load %arg9[%211, %c0_114] : memref<32x128xf32, #tpu.memory_space<vmem>>, vector<8x128xf32>
    %c0_115 = arith.constant 0 : index
    %c0_116 = arith.constant 0 : index
    %213 = vector.load %arg13[%c0_115, %c0_116] : memref<8x32xf32, #tpu.memory_space<vmem>>, vector<8x32xf32>
    %cst_117 = arith.constant dense<0.000000e+00> : vector<8x128xf32>
    %214 = tpu.matmul %213, %4, %cst_117 {dimension_numbers = #tpu.dot_dimension_numbers<[1], [0], [0], [1], [0, 0, 1, 1], [], []>} : vector<8x32xf32>, vector<32x128xf32>, vector<8x128xf32> -> vector<8x128xf32>
    %215 = arith.addf %212, %214 : vector<8x128xf32>
    %c0_118 = arith.constant 0 : index
    %c0_119 = arith.constant 0 : index
    %216 = vector.load %arg14[%c0_118, %c0_119] : memref<8x32xf32, #tpu.memory_space<vmem>>, vector<8x32xf32>
    %217 = vector.extract_strided_slice %215 {offsets = [0, 0], sizes = [8, 96], strides = [1, 1]} : vector<8x128xf32> to vector<8x96xf32>
    %218 = arith.negf %217 : vector<8x96xf32>
    %219 = math.exp %218 : vector<8x96xf32>
    %cst_120 = arith.constant 1.000000e+00 : f32
    %220 = vector.broadcast %cst_120 : f32 to vector<8x96xf32>
    %221 = arith.addf %220, %219 : vector<8x96xf32>
    %222 = arith.divf %220, %221 : vector<8x96xf32>
    %223 = vector.extract_strided_slice %215 {offsets = [0, 96], sizes = [8, 32], strides = [1, 1]} : vector<8x128xf32> to vector<8x32xf32>
    %224 = math.tanh %223 : vector<8x32xf32>
    %225 = vector.extract_strided_slice %222 {offsets = [0, 0], sizes = [8, 32], strides = [1, 1]} : vector<8x96xf32> to vector<8x32xf32>
    %226 = vector.extract_strided_slice %222 {offsets = [0, 32], sizes = [8, 32], strides = [1, 1]} : vector<8x96xf32> to vector<8x32xf32>
    %227 = vector.extract_strided_slice %222 {offsets = [0, 64], sizes = [8, 32], strides = [1, 1]} : vector<8x96xf32> to vector<8x32xf32>
    %228 = arith.mulf %226, %216 : vector<8x32xf32>
    %229 = arith.mulf %225, %224 : vector<8x32xf32>
    %230 = arith.addf %228, %229 : vector<8x32xf32>
    %231 = math.tanh %230 : vector<8x32xf32>
    %232 = arith.mulf %227, %231 : vector<8x32xf32>
    %c0_121 = arith.constant 0 : index
    %c0_122 = arith.constant 0 : index
    %233 = vector.load %arg13[%c0_121, %c0_122] : memref<8x32xf32, #tpu.memory_space<vmem>>, vector<8x32xf32>
    tpu.vector_store %arg13[%c0_121, %c0_122], %232 {strides = array<i32>} : memref<8x32xf32, #tpu.memory_space<vmem>>, vector<8x32xf32>,
    %c0_123 = arith.constant 0 : index
    %c0_124 = arith.constant 0 : index
    %234 = vector.load %arg14[%c0_123, %c0_124] : memref<8x32xf32, #tpu.memory_space<vmem>>, vector<8x32xf32>
    tpu.vector_store %arg14[%c0_123, %c0_124], %230 {strides = array<i32>} : memref<8x32xf32, #tpu.memory_space<vmem>>, vector<8x32xf32>,
    %c4_i32_125 = arith.constant 4 : i32
    %c3_i32_126 = arith.constant 3 : i32
    %235 = arith.cmpi eq, %arg0, %c3_i32_126 : i32
    %236 = arith.extui %235 : i1 to i32
    %c0_i32_127 = arith.constant 0 : i32
    %237 = arith.cmpi ne, %236, %c0_i32_127 : i32
    scf.if %237 {
      %c0_128 = arith.constant 0 : index
      %c0_129 = arith.constant 0 : index
      %238 = vector.load %arg13[%c0_128, %c0_129] : memref<8x32xf32, #tpu.memory_space<vmem>>, vector<8x32xf32>
      %c0_130 = arith.constant 0 : index
      %c0_131 = arith.constant 0 : index
      %239 = vector.load %arg8[%c0_130, %c0_131] : memref<8x32xf32, #tpu.memory_space<vmem>>, vector<8x32xf32>
      tpu.vector_store %arg8[%c0_130, %c0_131], %238 {strides = array<i32>} : memref<8x32xf32, #tpu.memory_space<vmem>>, vector<8x32xf32>,
    } else {
    }
    return
  }
  func.func @transform_0(%arg0: i32) -> (i32, i32) {
    %c0_i32 = arith.constant 0 : i32
    %c0_i32_0 = arith.constant 0 : i32
    return %arg0, %c0_i32 : i32, i32
  }
  func.func @transform_1(%arg0: i32) -> (i32, i32) {
    %c0_i32 = arith.constant 0 : i32
    %c0_i32_0 = arith.constant 0 : i32
    %c0_i32_1 = arith.constant 0 : i32
    return %c0_i32, %c0_i32_0 : i32, i32
  }
  func.func @transform_2(%arg0: i32) -> (i32, i32) {
    %c0_i32 = arith.constant 0 : i32
    %c0_i32_0 = arith.constant 0 : i32
    %c0_i32_1 = arith.constant 0 : i32
    return %c0_i32, %c0_i32_0 : i32, i32
  }
  func.func @transform_3(%arg0: i32) -> (i32, i32) {
    %c0_i32 = arith.constant 0 : i32
    %c0_i32_0 = arith.constant 0 : i32
    %c0_i32_1 = arith.constant 0 : i32
    return %c0_i32, %c0_i32_0 : i32, i32
  }
  func.func @transform_4(%arg0: i32) -> (i32, i32) {
    %c0_i32 = arith.constant 0 : i32
    %c0_i32_0 = arith.constant 0 : i32
    %c0_i32_1 = arith.constant 0 : i32
    return %c0_i32, %c0_i32_0 : i32, i32
  }
  func.func @transform_5(%arg0: i32) -> (i32, i32) {
    %c0_i32 = arith.constant 0 : i32
    %c0_i32_0 = arith.constant 0 : i32
    %c0_i32_1 = arith.constant 0 : i32
    return %c0_i32, %c0_i32_0 : i32, i32
  }
  func.func @transform_6(%arg0: i32) -> (i32, i32) {
    %c0_i32 = arith.constant 0 : i32
    %c0_i32_0 = arith.constant 0 : i32
    %c0_i32_1 = arith.constant 0 : i32
    return %c0_i32, %c0_i32_0 : i32, i32
  }
  func.func @transform_7(%arg0: i32) -> (i32, i32) {
    %c0_i32 = arith.constant 0 : i32
    %c0_i32_0 = arith.constant 0 : i32
    %c0_i32_1 = arith.constant 0 : i32
    return %c0_i32, %c0_i32_0 : i32, i32
  }
}

</mosaic_0001>

<bundles_post_ra>
// kernel: _lambda_.1
= control target key start
LH: loop header
LB: loop body
LE: loop exit
PB: predicated region body
PF: predicated region fallthrough
CT: control target
= control target key end

     0   :  { %s1228_s24 = smov 0   ;;  %s1422_s0 = inlined_call_operand.vmem [shape: f32[128,8], index: 0, kind: input, shape index: {}]   ;;  %s1423_s1 = inlined_call_operand.vmem [shape: f32[8,128], index: 1, kind: input, shape index: {}]   ;;  %s1424_s2 = inlined_call_operand.vmem [shape: f32[32,128], index: 2, kind: input, shape index: {}]   ;;  %s1425_s3 = inlined_call_operand.vmem [shape: f32[1,128], index: 3, kind: input, shape index: {}]   ;;  %s1426_s4 = inlined_call_operand.vmem [shape: f32[32,128], index: 4, kind: input, shape index: {}]   ;;  %s1427_s5 = inlined_call_operand.vmem [shape: f32[32,128], index: 5, kind: input, shape index: {}]   ;;  %s1428_s6 = inlined_call_operand.vmem [shape: f32[1,128], index: 6, kind: input, shape index: {}]   ;;  %s1429_s7 = inlined_call_operand.vmem [shape: f32[8,32], index: 7, kind: output, shape index: {}]  }
   0x1 LB: > { %s1234_s25 = sadd.s32 4294967295, %s1182_s24   ;;  %p1067_p0 = scmp.ge.s32.totalorder %s1182_s24, 1  ;;  %s1182_s24 = sphi %s1228_s24, %s17_s24  }
   0x2   : > { %p233_p1 = scmp.lt.s32.totalorder %s1182_s24, 5 }
   0x4   : > { %p234_p2 = pnand %p1067_p0, %p233_p1 }
   0x5   : > { %s1068_s26 = sshll.u32 (!%p234_p2), %s1234_s25, 2  ;;  %p1070_p4 = scmp.ne.s32.totalorder (!%p234_p2), %s1234_s25, 0 }
   0x6   : > { %237 = sbr.rel (%p234_p2) target bundleno = 3560 (0xde8), region = 48  ;;  %p261_p3 = scmp.lt.s32.totalorder (!%p234_p2), %s1068_s26, 15 }
   0xb   : > { %s1431_s26 = smov (!%p261_p3, %s1068_s26), 15  ;;  %269 = sbr.rel (%p1070_p4) target bundleno = 21 (0x15), region = 52 }
   0xc   : > { %s1069_s27 = sshll.u32 %s1431_s26, 3 }
   0xd   : > { %s1242_s30 = scalar_lea.vmem %s1422_s0, %s1069_s27 }
  0x10   : > { %vm270_vm0 = vcmask 261120   ;;  %v1184_v0 = vmov 0.0  }
  0x11   : > { %271 = vst.msk [vmem:[#allocation4] sm:$0xff] %vm270_vm0, %v1184_v0 }
  0x12   : > { %272 = vst.msk [vmem:[#allocation5] sm:$0xff] %vm270_vm0, %v1184_v0 }
  0x13   : > { %273 = vst.msk [vmem:[#allocation6] sm:$0xff] %vm270_vm0, %v1184_v0 }
  0x14   : > { %274 = vst.msk [vmem:[#allocation7] sm:$0xff] %vm270_vm0, %v1184_v0 }
  0x15 PF: > { %v278_v1 = vld [vmem:[%s1424_s2 + $0x18] sm:$0xff]  ;;  %v277_v2 = vld [vmem:[%s1424_s2 + $0x10] sm:$0xff]  ;;  %v287_v3 = vld [vmem:[%s1423_s1] sm:$0xff]  ;;  %vm292_vm1 = vcmask 64512   ;;  %vm340_vm2 = vcmask 261120   ;;  %s1185_s20 = smov 32  }
  0x16   : > { %356 = vmatpush.msra.mxu1 %v278_v1  ;;  %320 = vmatpush.msra.mxu0 %v287_v3  ;;  %v283_v4 = vld [vmem:[%s1242_s30] sm:$0xff]  ;;  %v276_v5 = vld [vmem:[%s1424_s2 + $0x8] sm:$0xff]  ;;  %s1186_s21 = smov 64   ;;  %s1187_s22 = smov 96   ;;  %v668_v37 = vld [vmem:[%s1426_s4 + $0x18] sm:$0xff] }
  0x17   : > { %1071 = vmatmul.msk.f32.vlgmr.msra.gmra.mxu0 %vm292_vm1, %v283_v4  ;;  %436 = vmatpush.msra.mxu3 %v278_v1  ;;  %v275_v6 = vld [vmem:[%s1424_s2] sm:$0xff]  ;;  %v667_v38 = vld [vmem:[%s1426_s4 + $0x10] sm:$0xff]  ;;  %v666_v39 = vld [vmem:[%s1426_s4 + $0x8] sm:$0xff]  ;;  %p1095_p5 = scmp.ne.s32.totalorder %s1234_s25, 3 }
  0x18   : > { %357 = vmatpush.msra.mxu1 %v277_v2  ;;  %v339_v7 = vld [vmem:[#allocation4] sm:$0xff]  ;;  %697 = vmatpush.msra.mxu2 %v668_v37  ;;  %v284_v41 = vld [vmem:[%s1242_s30 + $0x8] sm:$0xff] }
  0x19   : > { %437 = vmatpush.msra.mxu3 %v277_v2  ;;  %v1266_v8 = vld [vmem:[%s1425_s3] ss:$0 sm:$0xff]  ;;  %v365_v14 = vld [vmem:[#allocation5] sm:$0xff] }
  0x1a   : > { %358 = vmatpush.msra.mxu1 %v276_v5  ;;  %698 = vmatpush.msra.mxu2 %v667_v38  ;;  %v665_v40 = vld [vmem:[%s1426_s4] sm:$0xff] }
  0x1b   : > { %438 = vmatpush.msra.mxu3 %v276_v5 }
  0x1c   : > { %359 = vmatpush.msra.mxu1 %v275_v6  ;;  %699 = vmatpush.msra.mxu2 %v666_v39 }
  0x1d   : > { %1075 = vmatmul.msk.f32.vlgmr.msra.gmra.mxu1 %vm340_vm2, %v339_v7  ;;  %439 = vmatpush.msra.mxu3 %v275_v6 }
  0x1e   : > { %598 = vmatpush.msrb.mxu1 %v278_v1  ;;  %700 = vmatpush.msra.mxu2 %v665_v40 }
  0x1f   : > { %517 = vmatpush.msrb.mxu3 %v278_v1  ;;  %1072 = vmatmul.msk.f32.gmra.mxu0 %vm292_vm1, %v284_v41 }
  0x20   : > { %599 = vmatpush.msrb.mxu1 %v277_v2 }
  0x21   : > { %518 = vmatpush.msrb.mxu3 %v277_v2 }
  0x22   : > { %600 = vmatpush.msrb.mxu1 %v276_v5 }
  0x23   : > { %519 = vmatpush.msrb.mxu3 %v276_v5 }
  0x24   : > { %601 = vmatpush.msrb.mxu1 %v275_v6 }
  0x25   : > { %520 = vmatpush.msrb.mxu3 %v275_v6 }
  0x94   : > { %v322_v9 = vpop.f32.mrf.mxu0 }
  0x95   : > { %v323_v10 = vadd.f32 %v1266_v8, %v322_v9 }
  0x9a   : > { %v361_v11 = vpop.f32.mrf.mxu1 }
  0x9b   : > { %v364_v12 = vadd.f32 %v361_v11, %v323_v10 }
  0x9c   : > { %v325_v47 = vpop.f32.mrf.mxu0 }
  0x9d   : > { %1112 = vtanh.f32 %v364_v12  ;;  %v1076_v15 = vmul.f32 -1.442695, %v364_v12  ;;  %v326_v48 = vadd.f32 %v1266_v8, %v325_v47 }
  0x9f   : > { %1114 = vpow2.f32 %v1076_v15  ;;  %v285_v15 = vld [vmem:[%s1242_s30 + $0x10] sm:$0xff] }
  0xa0   : > { %1073 = vmatmul.msk.f32.gmra.mxu0 %vm292_vm1, %v285_v15 }
  0xa3   : > { %v1113_v13 = vpop.eup %1112 }
  0xa4   : > { %392 = vrot.lane.b32.xlu0 %v1113_v13, %s1185_s20  ;;  %v1306_v13 = vld [vmem:[%s1427_s5 + $0x18] sm:$0xff] }
  0xa5   : > { %v1115_v16 = vpop.eup %1114  ;;  %813 = vmatpush.msra.mxu1 %v1306_v13 }
  0xa6   : > { %v369_v17 = vadd.f32 1.0, %v1115_v16  ;;  %v1319_v16 = vld [vmem:[%s1427_s5 + $0x8] sm:$0xff] }
  0xa8   : > { %1116 = vrcp.f32 %v369_v17  ;;  %v381_v23 = vand.u32 2147483648, %v369_v17  ;;  %vm375_vm4 = vweird.f32 %v369_v17  ;;  %v379_v24 = vand.u32 2147483647, %v369_v17 }
  0xaa   : > { %v382_v26 = vor.u32 1.1754944e-38, %v381_v23  ;;  %vm380_vm6 = vcmp.eq.f32.partialorder %v379_v24, 8.507059e+37 }
  0xac   : > { %387 = vrot.lane.b32.xlu0 %v365_v14, %s1185_s20  ;;  %v1311_v14 = vld [vmem:[%s1427_s5 + $0x10] sm:$0xff] }
  0xad   : > { %814 = vmatpush.msra.mxu1 %v1311_v14 }
  0xae   : > { %v1117_v18 = vpop.eup %1116 }
  0xaf   : > { %v371_v19 = vmul.f32 %v1117_v18, %v369_v17  ;;  %vm376_vm3 = vweird.f32 %v1117_v18  ;;  %v1326_v17 = vld [vmem:[%s1427_s5] sm:$0xff]  ;;  %815 = vmatpush.msra.mxu1 %v1319_v16 }
  0xb0   : > { %vm377_vm5 = vmor %vm375_vm4, %vm376_vm3 }
  0xb1   : > { %v372_v20 = vsub.f32 1.0, %v371_v19  ;;  %816 = vmatpush.msra.mxu1 %v1326_v17 }
  0xb3   : > { %v373_v21 = vmul.f32 %v1117_v18, %v372_v20 }
  0xb5   : > { %v374_v22 = vadd.f32 %v1117_v18, %v373_v21  ;;  %v719_v21 = vld [vmem:[#allocation6] sm:$0xff] }
  0xb7   : > { %v378_v25 = vsel %vm377_vm5, %v1117_v18, %v374_v22 }
  0xb8   : > { %v383_v28 = vsel %vm380_vm6, %v382_v26, %v378_v25  ;;  %v1346_v26 = vld [vmem:[%s1428_s6] ss:$0 sm:$0xff] }
 0x116   : > { %v393_v27 = vpop.permute.xlu0 %392 }
 0x117   : > { %v395_v29 = vmul.f32 %v393_v27, %v383_v28 }
 0x119   : > { %397 = vrot.lane.b32.xlu1 %v395_v29, %s1185_s20 }
 0x11d   : > { %v328_v22 = vpop.f32.mrf.mxu0 }
 0x11e   : > { %v388_v30 = vpop.permute.xlu0 %387  ;;  %v329_v23 = vadd.f32 %v1266_v8, %v328_v22 }
 0x11f   : > { %v390_v31 = vmul.f32 %v388_v30, %v383_v28 }
 0x18b   : > { %v398_v32 = vpop.permute.xlu1 %397 }
 0x18c   : > { %v400_v33 = vadd.f32 %v398_v32, %v390_v31 }
 0x18e   : > { %1118 = vtanh.f32 %v400_v33 }
 0x194   : > { %v1119_v34 = vpop.eup %1118 }
 0x195   : > { %403 = vrot.lane.b32.xlu1 %v1119_v34, %s1185_s20 }
 0x207   : > { %v404_v35 = vpop.permute.xlu1 %403 }
 0x208   : > { %v406_v36 = vmul.f32 %v404_v35, %v383_v28 }
 0x20a   : > { %408 = vrot.lane.b32.xlu2 %v406_v36, %s1186_s21 }
 0x212   : > { %413 = vrot.lane.b32.xlu2 %v400_v33, %s1187_s22  ;;  %v744_v33 = vld [vmem:[#allocation7] sm:$0xff] }
 0x264   : > { %v409_v42 = vpop.permute.xlu2 %408 }
 0x265   : > { %411 = vst.msk [vmem:[#allocation4] sm:$0xff] %vm340_vm2, %v409_v42 }
 0x266   : > { %417 = vst.msk [vmem:[#allocation3] sm:$0xff] %vm340_vm2, %v409_v42 }
 0x26c   : > { %v414_v43 = vpop.permute.xlu2 %413  ;;  %v420_v44 = vld [vmem:[#allocation4] sm:$0xff] }
 0x26d   : > { %416 = vst.msk [vmem:[#allocation5] sm:$0xff] %vm340_vm2, %v414_v43  ;;  %1077 = vmatmul.msk.f32.vlgmr.msra.gmra.mxu3 %vm340_vm2, %v420_v44  ;;  %v661_v45 = vld [vmem:[#allocation3] sm:$0xff] }
 0x26e   : > { %1083 = vmatmul.msk.f32.vlgmr.msra.gmra.mxu2 %vm340_vm2, %v661_v45  ;;  %735 = vmatpush.msra.mxu3 %v1306_v13 }
 0x270   : > { %736 = vmatpush.msra.mxu3 %v1311_v14 }
 0x272   : > { %737 = vmatpush.msra.mxu3 %v1319_v16 }
 0x274   : > { %v445_v46 = vld [vmem:[#allocation5] sm:$0xff]  ;;  %738 = vmatpush.msra.mxu3 %v1326_v17 }
 0x275   : > { %467 = vrot.lane.b32.xlu1 %v445_v46, %s1185_s20 }
 0x2e7   : > { %v468_v3 = vpop.permute.xlu1 %467 }
 0x2f0   : > { %v441_v49 = vpop.f32.mrf.mxu3 }
 0x2f1   : > { %v444_v50 = vadd.f32 %v441_v49, %v326_v48  ;;  %v702_v27 = vpop.f32.mrf.mxu2 }
 0x2f2   : > { %v703_v28 = vadd.f32 %v1346_v26, %v702_v27 }
 0x2f3   : > { %1120 = vtanh.f32 %v444_v50  ;;  %v1078_v52 = vmul.f32 -1.442695, %v444_v50 }
 0x2f5   : > { %1122 = vpow2.f32 %v1078_v52 }
 0x2f9   : > { %v1121_v51 = vpop.eup %1120 }
 0x2fa   : > { %472 = vrot.lane.b32.xlu0 %v1121_v51, %s1185_s20 }
 0x2fb   : > { %v1123_v53 = vpop.eup %1122 }
 0x2fc   : > { %v449_v54 = vadd.f32 1.0, %v1123_v53 }
 0x2fe   : > { %1124 = vrcp.f32 %v449_v54  ;;  %v461_v60 = vand.u32 2147483648, %v449_v54  ;;  %vm455_vm8 = vweird.f32 %v449_v54  ;;  %v459_v61 = vand.u32 2147483647, %v449_v54 }
 0x300   : > { %v462_v63 = vor.u32 1.1754944e-38, %v461_v60  ;;  %vm460_vm10 = vcmp.eq.f32.partialorder %v459_v61, 8.507059e+37 }
 0x304   : > { %v1125_v55 = vpop.eup %1124 }
 0x305   : > { %v451_v56 = vmul.f32 %v1125_v55, %v449_v54  ;;  %vm456_vm7 = vweird.f32 %v1125_v55 }
 0x306   : > { %vm457_vm9 = vmor %vm455_vm8, %vm456_vm7 }
 0x307   : > { %v452_v57 = vsub.f32 1.0, %v451_v56 }
 0x309   : > { %v453_v58 = vmul.f32 %v1125_v55, %v452_v57 }
 0x30b   : > { %v454_v59 = vadd.f32 %v1125_v55, %v453_v58 }
 0x30d   : > { %v458_v62 = vsel %vm457_vm9, %v1125_v55, %v454_v59 }
 0x30e   : > { %v463_v1 = vsel %vm460_vm10, %v462_v63, %v458_v62 }
 0x30f   : > { %v470_v4 = vmul.f32 %v468_v3, %v463_v1 }
 0x36c   : > { %v473_v0 = vpop.permute.xlu0 %472 }
 0x36d   : > { %v475_v2 = vmul.f32 %v473_v0, %v463_v1 }
 0x36f   : > { %477 = vrot.lane.b32.xlu2 %v475_v2, %s1185_s20 }
 0x3c9   : > { %v478_v5 = vpop.permute.xlu2 %477 }
 0x3ca   : > { %v480_v6 = vadd.f32 %v478_v5, %v470_v4 }
 0x3cc   : > { %1126 = vtanh.f32 %v480_v6  ;;  %493 = vrot.lane.b32.xlu2 %v480_v6, %s1187_s22 }
 0x3d2   : > { %v1127_v7 = vpop.eup %1126 }
 0x3d3   : > { %483 = vrot.lane.b32.xlu0 %v1127_v7, %s1185_s20 }
 0x426   : > { %v494_v9 = vpop.permute.xlu2 %493 }
 0x427   : > { %496 = vst.msk [vmem:[#allocation5] sm:$0xff] %vm340_vm2, %v494_v9 }
 0x42e   : > { %v526_v10 = vld [vmem:[#allocation5] sm:$0xff] }
 0x42f   : > { %548 = vrot.lane.b32.xlu2 %v526_v10, %s1185_s20 }
 0x445   : > { %v484_v11 = vpop.permute.xlu0 %483 }
 0x446   : > { %v486_v12 = vmul.f32 %v484_v11, %v463_v1 }
 0x448   : > { %488 = vrot.lane.b32.xlu1 %v486_v12, %s1186_s21 }
 0x489   : > { %v549_v0 = vpop.permute.xlu2 %548 }
 0x4ba   : > { %v489_v18 = vpop.permute.xlu1 %488 }
 0x4bb   : > { %491 = vst.msk [vmem:[#allocation4] sm:$0xff] %vm340_vm2, %v489_v18 }
 0x4bc   : > { %498 = vst.msk [vmem:[#allocation3 + $0x8] sm:$0xff] %vm340_vm2, %v489_v18 }
 0x4c2   : > { %v501_v19 = vld [vmem:[#allocation4] sm:$0xff] }
 0x4c3   : > { %1079 = vmatmul.msk.f32.vlgmr.msrb.gmra.mxu3 %vm340_vm2, %v501_v19  ;;  %v662_v20 = vld [vmem:[#allocation3 + $0x8] sm:$0xff] }
 0x4c4   : > { %1084 = vmatmul.msk.f32.gmra.mxu2 %vm340_vm2, %v662_v20  ;;  %891 = vmatpush.msrb.mxu3 %v1306_v13 }
 0x4c6   : > { %892 = vmatpush.msrb.mxu3 %v1311_v14 }
 0x4c8   : > { %893 = vmatpush.msrb.mxu3 %v1319_v16 }
 0x4ca   : > { %894 = vmatpush.msrb.mxu3 %v1326_v17 }
 0x4cb   : > { %1087 = vmatmul.msk.f32.vlgmr.msra.gmra.mxu3 %vm340_vm2, %v719_v21  ;;  %v286_v21 = vld [vmem:[%s1242_s30 + $0x18] sm:$0xff] }
 0x4cc   : > { %1074 = vmatmul.msk.f32.gmra.mxu0 %vm292_vm1, %v286_v21 }
 0x546   : > { %v522_v24 = vpop.f32.mrf.mxu3 }
 0x547   : > { %v525_v25 = vadd.f32 %v522_v24, %v329_v23 }
 0x549   : > { %1128 = vtanh.f32 %v525_v25  ;;  %v1080_v34 = vmul.f32 -1.442695, %v525_v25 }
 0x54e   : > { %v740_v29 = vpop.f32.mrf.mxu3 }
 0x54f   : > { %v1129_v30 = vpop.eup %1128  ;;  %v743_v31 = vadd.f32 %v740_v29, %v703_v28  ;;  %v705_v29 = vpop.f32.mrf.mxu2 }
 0x550   : > { %553 = vrot.lane.b32.xlu0 %v1129_v30, %s1185_s20  ;;  %v706_v30 = vadd.f32 %v1346_v26, %v705_v29 }
 0x551   : > { %1130 = vtanh.f32 %v743_v31  ;;  %v1088_v35 = vmul.f32 -1.442695, %v743_v31 }
 0x552   : > { %1132 = vpow2.f32 %v1080_v34 }
 0x553   : > { %1134 = vpow2.f32 %v1088_v35 }
 0x557   : > { %v1131_v32 = vpop.eup %1130 }
 0x558   : > { %771 = vrot.lane.b32.xlu1 %v1131_v32, %s1185_s20  ;;  %v1133_v36 = vpop.eup %1132 }
 0x559   : > { %v530_v37 = vadd.f32 1.0, %v1133_v36  ;;  %v1135_v38 = vpop.eup %1134 }
 0x55a   : > { %v748_v39 = vadd.f32 1.0, %v1135_v38 }
 0x55b   : > { %1136 = vrcp.f32 %v530_v37  ;;  %v542_v48 = vand.u32 2147483648, %v530_v37  ;;  %vm536_vm12 = vweird.f32 %v530_v37  ;;  %v540_v49 = vand.u32 2147483647, %v530_v37 }
 0x55c   : > { %1138 = vrcp.f32 %v748_v39  ;;  %v760_v57 = vand.u32 2147483648, %v748_v39  ;;  %vm754_vm0 = vweird.f32 %v748_v39  ;;  %v758_v58 = vand.u32 2147483647, %v748_v39 }
 0x55d   : > { %v543_v52 = vor.u32 1.1754944e-38, %v542_v48  ;;  %vm541_vm14 = vcmp.eq.f32.partialorder %v540_v49, 8.507059e+37 }
 0x55e   : > { %v761_v60 = vor.u32 1.1754944e-38, %v760_v57  ;;  %vm759_vm4 = vcmp.eq.f32.partialorder %v758_v58, 8.507059e+37 }
 0x560   : > { %766 = vrot.lane.b32.xlu1 %v744_v33, %s1185_s20 }
 0x561   : > { %v1137_v40 = vpop.eup %1136 }
 0x562   : > { %v532_v41 = vmul.f32 %v1137_v40, %v530_v37  ;;  %v1139_v43 = vpop.eup %1138  ;;  %vm537_vm11 = vweird.f32 %v1137_v40 }
 0x563   : > { %v750_v45 = vmul.f32 %v1139_v43, %v748_v39  ;;  %vm538_vm13 = vmor %vm536_vm12, %vm537_vm11  ;;  %vm755_vm15 = vweird.f32 %v1139_v43 }
 0x564   : > { %v533_v42 = vsub.f32 1.0, %v532_v41  ;;  %vm756_vm3 = vmor %vm754_vm0, %vm755_vm15 }
 0x565   : > { %v751_v47 = vsub.f32 1.0, %v750_v45 }
 0x566   : > { %v534_v44 = vmul.f32 %v1137_v40, %v533_v42 }
 0x567   : > { %v752_v51 = vmul.f32 %v1139_v43, %v751_v47  ;;  %v331_v47 = vpop.f32.mrf.mxu0 }
 0x568   : > { %v535_v46 = vadd.f32 %v1137_v40, %v534_v44 }
 0x569   : > { %v753_v56 = vadd.f32 %v1139_v43, %v752_v51 }
 0x56a   : > { %v539_v50 = vsel %vm538_vm13, %v1137_v40, %v535_v46 }
 0x56b   : > { %v544_v54 = vsel %vm541_vm14, %v543_v52, %v539_v50  ;;  %v757_v59 = vsel %vm756_vm3, %v1139_v43, %v753_v56  ;;  %v332_v50 = vadd.f32 %v1266_v8, %v331_v47 }
 0x56c   : > { %v762_v62 = vsel %vm759_vm4, %v761_v60, %v757_v59  ;;  %v551_v6 = vmul.f32 %v549_v0, %v544_v54 }
 0x5c2   : > { %v554_v53 = vpop.permute.xlu0 %553 }
 0x5c3   : > { %v556_v55 = vmul.f32 %v554_v53, %v544_v54 }
 0x5c5   : > { %558 = vrot.lane.b32.xlu0 %v556_v55, %s1185_s20 }
 0x5ca   : > { %v772_v61 = vpop.permute.xlu1 %771 }
 0x5cb   : > { %v774_v63 = vmul.f32 %v772_v61, %v762_v62 }
 0x5cd   : > { %776 = vrot.lane.b32.xlu2 %v774_v63, %s1185_s20 }
 0x5d2   : > { %v767_v1 = vpop.permute.xlu1 %766 }
 0x5d3   : > { %v769_v2 = vmul.f32 %v767_v1, %v762_v62 }
 0x627   : > { %v777_v3 = vpop.permute.xlu2 %776 }
 0x628   : > { %v779_v4 = vadd.f32 %v777_v3, %v769_v2 }
 0x62a   : > { %1140 = vtanh.f32 %v779_v4 }
 0x630   : > { %v1141_v5 = vpop.eup %1140 }
 0x631   : > { %782 = vrot.lane.b32.xlu1 %v1141_v5, %s1185_s20 }
 0x637   : > { %v559_v7 = vpop.permute.xlu0 %558 }
 0x638   : > { %v561_v9 = vadd.f32 %v559_v7, %v551_v6 }
 0x639   : > { %792 = vrot.lane.b32.xlu1 %v779_v4, %s1187_s22 }
 0x63a   : > { %1142 = vtanh.f32 %v561_v9 }
 0x640   : > { %v1143_v10 = vpop.eup %1142 }
 0x641   : > { %564 = vrot.lane.b32.xlu0 %v1143_v10, %s1185_s20 }
 0x6a3   : > { %v783_v11 = vpop.permute.xlu1 %782 }
 0x6a4   : > { %v785_v12 = vmul.f32 %v783_v11, %v762_v62 }
 0x6a6   : > { %787 = vrot.lane.b32.xlu0 %v785_v12, %s1186_s21 }
 0x6ab   : > { %v793_v15 = vpop.permute.xlu1 %792 }
 0x6ac   : > { %795 = vst.msk [vmem:[#allocation7] sm:$0xff] %vm340_vm2, %v793_v15 }
 0x6b3   : > { %v565_v18 = vpop.permute.xlu0 %564  ;;  %v822_v19 = vld [vmem:[#allocation7] sm:$0xff] }
 0x6b4   : > { %v567_v20 = vmul.f32 %v565_v18, %v544_v54  ;;  %844 = vrot.lane.b32.xlu0 %v822_v19, %s1185_s20 }
 0x6b6   : > { %569 = vrot.lane.b32.xlu2 %v567_v20, %s1186_s21 }
 0x710   : > { %v570_v22 = vpop.permute.xlu2 %569 }
 0x711   : > { %572 = vst.msk [vmem:[#allocation4] sm:$0xff] %vm340_vm2, %v570_v22 }
 0x712   : > { %579 = vst.msk [vmem:[#allocation3 + $0x10] sm:$0xff] %vm340_vm2, %v570_v22 }
 0x718   : > { %v788_v23 = vpop.permute.xlu0 %787  ;;  %v582_v24 = vld [vmem:[#allocation4] sm:$0xff] }
 0x719   : > { %790 = vst.msk [vmem:[#allocation6] sm:$0xff] %vm340_vm2, %v788_v23  ;;  %1081 = vmatmul.msk.f32.vlgmr.msrb.gmra.mxu1 %vm340_vm2, %v582_v24  ;;  %v663_v25 = vld [vmem:[#allocation3 + $0x10] sm:$0xff] }
 0x71a   : > { %1085 = vmatmul.msk.f32.gmra.mxu2 %vm340_vm2, %v663_v25  ;;  %969 = vmatpush.msrb.mxu1 %v1306_v13 }
 0x71c   : > { %970 = vmatpush.msrb.mxu1 %v1311_v14 }
 0x71e   : > { %971 = vmatpush.msrb.mxu1 %v1319_v16 }
 0x720   : > { %v797_v27 = vld [vmem:[#allocation6] sm:$0xff]  ;;  %972 = vmatpush.msrb.mxu1 %v1326_v17 }
 0x721   : > { %1089 = vmatmul.msk.f32.vlgmr.msra.gmra.mxu1 %vm340_vm2, %v797_v27 }
 0x726   : > { %v845_v45 = vpop.permute.xlu0 %844 }
 0x796   : > { %v603_v28 = vpop.f32.mrf.mxu1 }
 0x797   : > { %v606_v51 = vadd.f32 %v603_v28, %v332_v50 }
 0x799   : > { %v1082_v56 = vmul.f32 -1.442695, %v606_v51 }
 0x79d   : > { %v708_v21 = vpop.f32.mrf.mxu2 }
 0x79e   : > { %v818_v31 = vpop.f32.mrf.mxu1  ;;  %v709_v22 = vadd.f32 %v1346_v26, %v708_v21 }
 0x79f   : > { %v821_v32 = vadd.f32 %v818_v31, %v706_v30 }
 0x7a1   : > { %1144 = vtanh.f32 %v821_v32  ;;  %v1090_v13 = vmul.f32 -1.442695, %v821_v32 }
 0x7a3   : > { %1146 = vpow2.f32 %v1090_v13 }
 0x7a7   : > { %v1145_v33 = vpop.eup %1144 }
 0x7a8   : > { %849 = vrot.lane.b32.xlu2 %v1145_v33, %s1185_s20 }
 0x7a9   : > { %v1147_v14 = vpop.eup %1146 }
 0x7aa   : > { %v826_v34 = vadd.f32 1.0, %v1147_v14 }
 0x7ac   : > { %1148 = vrcp.f32 %v826_v34  ;;  %v838_v38 = vand.u32 2147483648, %v826_v34  ;;  %vm832_vm5 = vweird.f32 %v826_v34  ;;  %v836_v39 = vand.u32 2147483647, %v826_v34 }
 0x7ae   : > { %v839_v41 = vor.u32 1.1754944e-38, %v838_v38  ;;  %vm837_vm7 = vcmp.eq.f32.partialorder %v836_v39, 8.507059e+37 }
 0x7b2   : > { %v1149_v16 = vpop.eup %1148 }
 0x7b3   : > { %v828_v35 = vmul.f32 %v1149_v16, %v826_v34  ;;  %vm833_vm1 = vweird.f32 %v1149_v16 }
 0x7b4   : > { %vm834_vm6 = vmor %vm832_vm5, %vm833_vm1 }
 0x7b5   : > { %v829_v17 = vsub.f32 1.0, %v828_v35 }
 0x7b7   : > { %v830_v36 = vmul.f32 %v1149_v16, %v829_v17 }
 0x7b9   : > { %v831_v37 = vadd.f32 %v1149_v16, %v830_v36 }
 0x7bb   : > { %v835_v40 = vsel %vm834_vm6, %v1149_v16, %v831_v37 }
 0x7bc   : > { %v840_v43 = vsel %vm837_vm7, %v839_v41, %v835_v40 }
 0x7bd   : > { %v847_v46 = vmul.f32 %v845_v45, %v840_v43 }
 0x802   : > { %v850_v42 = vpop.permute.xlu2 %849 }
 0x803   : > { %v852_v44 = vmul.f32 %v850_v42, %v840_v43 }
 0x805   : > { %854 = vrot.lane.b32.xlu1 %v852_v44, %s1185_s20 }
 0x80d   : > { %574 = vrot.lane.b32.xlu1 %v561_v9, %s1187_s22 }
 0x877   : > { %v855_v48 = vpop.permute.xlu1 %854 }
 0x878   : > { %v857_v49 = vadd.f32 %v855_v48, %v847_v46 }
 0x87a   : > { %1150 = vtanh.f32 %v857_v49 }
 0x87b   : > { %1152 = vtanh.f32 %v606_v51 }
 0x87c   : > { %1154 = vpow2.f32 %v1082_v56 }
 0x87f   : > { %v575_v52 = vpop.permute.xlu1 %574 }
 0x880   : > { %v1151_v53 = vpop.eup %1150  ;;  %577 = vst.msk [vmem:[#allocation5] sm:$0xff] %vm340_vm2, %v575_v52 }
 0x881   : > { %860 = vrot.lane.b32.xlu2 %v1151_v53, %s1185_s20  ;;  %v1153_v54 = vpop.eup %1152 }
 0x882   : > { %v1155_v57 = vpop.eup %1154 }
 0x883   : > { %v611_v58 = vadd.f32 1.0, %v1155_v57 }
 0x885   : > { %1156 = vrcp.f32 %v611_v58  ;;  %v623_v1 = vand.u32 2147483648, %v611_v58  ;;  %vm617_vm9 = vweird.f32 %v611_v58  ;;  %v621_v2 = vand.u32 2147483647, %v611_v58 }
 0x887   : > { %v607_v55 = vld [vmem:[#allocation5] sm:$0xff]  ;;  %v624_v4 = vor.u32 1.1754944e-38, %v623_v1  ;;  %vm622_vm11 = vcmp.eq.f32.partialorder %v621_v2, 8.507059e+37 }
 0x889   : > { %634 = vrot.lane.b32.xlu2 %v1153_v54, %s1185_s20 }
 0x88b   : > { %v1157_v8 = vpop.eup %1156 }
 0x88c   : > { %v613_v59 = vmul.f32 %v1157_v8, %v611_v58  ;;  %vm618_vm8 = vweird.f32 %v1157_v8 }
 0x88d   : > { %vm619_vm10 = vmor %vm617_vm9, %vm618_vm8 }
 0x88e   : > { %v614_v62 = vsub.f32 1.0, %v613_v59 }
 0x890   : > { %v615_v63 = vmul.f32 %v1157_v8, %v614_v62 }
 0x891   : > { %629 = vrot.lane.b32.xlu2 %v607_v55, %s1185_s20 }
 0x892   : > { %v616_v0 = vadd.f32 %v1157_v8, %v615_v63 }
 0x894   : > { %v620_v3 = vsel %vm619_vm10, %v1157_v8, %v616_v0 }
 0x895   : > { %v625_v6 = vsel %vm622_vm11, %v624_v4, %v620_v3 }
 0x8db   : > { %v861_v60 = vpop.permute.xlu2 %860 }
 0x8dc   : > { %v863_v61 = vmul.f32 %v861_v60, %v840_v43 }
 0x8de   : > { %865 = vrot.lane.b32.xlu0 %v863_v61, %s1186_s21 }
 0x8e3   : > { %v635_v5 = vpop.permute.xlu2 %634 }
 0x8e4   : > { %v637_v7 = vmul.f32 %v635_v5, %v625_v6 }
 0x8e6   : > { %870 = vrot.lane.b32.xlu0 %v857_v49, %s1187_s22 }
 0x8eb   : > { %v630_v12 = vpop.permute.xlu2 %629 }
 0x8ec   : > { %v632_v15 = vmul.f32 %v630_v12, %v625_v6 }
 0x8ee   : > { %639 = vrot.lane.b32.xlu0 %v637_v7, %s1185_s20 }
 0x950   : > { %v866_v9 = vpop.permute.xlu0 %865 }
 0x951   : > { %868 = vst.msk [vmem:[#allocation6] sm:$0xff] %vm340_vm2, %v866_v9 }
 0x958   : > { %v871_v10 = vpop.permute.xlu0 %870  ;;  %v875_v11 = vld [vmem:[#allocation6] sm:$0xff] }
 0x959   : > { %873 = vst.msk [vmem:[#allocation7] sm:$0xff] %vm340_vm2, %v871_v10  ;;  %1091 = vmatmul.msk.f32.vlgmr.msrb.gmra.mxu3 %vm340_vm2, %v875_v11 }
 0x960   : > { %v640_v18 = vpop.permute.xlu0 %639  ;;  %v900_v27 = vld [vmem:[#allocation7] sm:$0xff] }
 0x961   : > { %v642_v19 = vadd.f32 %v640_v18, %v632_v15 }
 0x963   : > { %1158 = vtanh.f32 %v642_v19 }
 0x969   : > { %v1159_v20 = vpop.eup %1158 }
 0x96a   : > { %645 = vrot.lane.b32.xlu0 %v1159_v20, %s1185_s20 }
 0x9dc   : > { %v896_v23 = vpop.f32.mrf.mxu3  ;;  %v646_v39 = vpop.permute.xlu0 %645 }
 0x9dd   : > { %v899_v24 = vadd.f32 %v896_v23, %v709_v22  ;;  %v648_v40 = vmul.f32 %v646_v39, %v625_v6 }
 0x9df   : > { %1160 = vtanh.f32 %v899_v24  ;;  %v1092_v28 = vmul.f32 -1.442695, %v899_v24 }
 0x9e1   : > { %1162 = vpow2.f32 %v1092_v28 }
 0x9e5   : > { %v1161_v25 = vpop.eup %1160 }
 0x9e6   : > { %927 = vrot.lane.b32.xlu1 %v1161_v25, %s1185_s20 }
 0x9e7   : > { %v1163_v29 = vpop.eup %1162 }
 0x9e8   : > { %v904_v30 = vadd.f32 1.0, %v1163_v29 }
 0x9ea   : > { %1164 = vrcp.f32 %v904_v30  ;;  %v916_v34 = vand.u32 2147483648, %v904_v30  ;;  %vm910_vm13 = vweird.f32 %v904_v30  ;;  %v914_v16 = vand.u32 2147483647, %v904_v30 }
 0x9ec   : > { %v917_v17 = vor.u32 1.1754944e-38, %v916_v34  ;;  %vm915_vm15 = vcmp.eq.f32.partialorder %v914_v16, 8.507059e+37 }
 0x9ee   : > { %922 = vrot.lane.b32.xlu1 %v900_v27, %s1185_s20 }
 0x9f0   : > { %v1165_v31 = vpop.eup %1164 }
 0x9f1   : > { %v906_v32 = vmul.f32 %v1165_v31, %v904_v30  ;;  %vm911_vm12 = vweird.f32 %v1165_v31 }
 0x9f2   : > { %vm912_vm14 = vmor %vm910_vm13, %vm911_vm12 }
 0x9f3   : > { %v907_v33 = vsub.f32 1.0, %v906_v32 }
 0x9f5   : > { %v908_v13 = vmul.f32 %v1165_v31, %v907_v33 }
 0x9f7   : > { %v909_v14 = vadd.f32 %v1165_v31, %v908_v13 }
 0x9f9   : > { %v913_v35 = vsel %vm912_vm14, %v1165_v31, %v909_v14 }
 0x9fa   : > { %v918_v37 = vsel %vm915_vm15, %v917_v17, %v913_v35 }
 0xa58   : > { %v928_v36 = vpop.permute.xlu1 %927 }
 0xa59   : > { %v930_v38 = vmul.f32 %v928_v36, %v918_v37 }
 0xa5b   : > { %932 = vrot.lane.b32.xlu2 %v930_v38, %s1185_s20 }
 0xa60   : > { %v923_v41 = vpop.permute.xlu1 %922 }
 0xa61   : > { %v925_v42 = vmul.f32 %v923_v41, %v918_v37 }
 0xa63   : > { %650 = vrot.lane.b32.xlu2 %v648_v40, %s1186_s21 }
 0xab5   : > { %v933_v43 = vpop.permute.xlu2 %932 }
 0xab6   : > { %v935_v44 = vadd.f32 %v933_v43, %v925_v42 }
 0xab8   : > { %1166 = vtanh.f32 %v935_v44 }
 0xabd   : > { %v651_v45 = vpop.permute.xlu2 %650 }
 0xabe   : > { %v1167_v46 = vpop.eup %1166  ;;  %653 = vst.msk [vmem:[#allocation4] sm:$0xff] %vm340_vm2, %v651_v45 }
 0xabf   : > { %660 = vst.msk [vmem:[#allocation3 + $0x18] sm:$0xff] %vm340_vm2, %v651_v45  ;;  %938 = vrot.lane.b32.xlu1 %v1167_v46, %s1185_s20 }
 0xac6   : > { %v664_v47 = vld [vmem:[#allocation3 + $0x18] sm:$0xff] }
 0xac7   : > { %1086 = vmatmul.msk.f32.gmra.mxu2 %vm340_vm2, %v664_v47  ;;  %948 = vrot.lane.b32.xlu1 %v935_v44, %s1187_s22 }
 0xb31   : > { %v939_v48 = vpop.permute.xlu1 %938 }
 0xb32   : > { %v941_v49 = vmul.f32 %v939_v48, %v918_v37 }
 0xb34   : > { %943 = vrot.lane.b32.xlu0 %v941_v49, %s1186_s21 }
 0xb39   : > { %v949_v50 = vpop.permute.xlu1 %948 }
 0xb3a   : > { %951 = vst.msk [vmem:[#allocation7] sm:$0xff] %vm340_vm2, %v949_v50 }
 0xb41   : > { %v978_v51 = vld [vmem:[#allocation7] sm:$0xff] }
 0xb42   : > { %1000 = vrot.lane.b32.xlu0 %v978_v51, %s1185_s20 }
 0xb4a   : > { %655 = vrot.lane.b32.xlu0 %v642_v19, %s1187_s22  ;;  %v711_v56 = vpop.f32.mrf.mxu2 }
 0xb4b   : > { %v712_v57 = vadd.f32 %v1346_v26, %v711_v56 }
 0xba6   : > { %v944_v52 = vpop.permute.xlu0 %943 }
 0xba7   : > { %946 = vst.msk [vmem:[#allocation6] sm:$0xff] %vm340_vm2, %v944_v52 }
 0xbae   : > { %v953_v53 = vld [vmem:[#allocation6] sm:$0xff] }
 0xbaf   : > { %1093 = vmatmul.msk.f32.vlgmr.msrb.gmra.mxu1 %vm340_vm2, %v953_v53 }
 0xbb4   : > { %v1001_v54 = vpop.permute.xlu0 %1000 }
 0xbbc   : > { %v656_v55 = vpop.permute.xlu0 %655 }
 0xbbd   : > { %658 = vst.msk [vmem:[#allocation5] sm:$0xff] %vm340_vm2, %v656_v55 }
 0xc2c   : > { %v974_v58 = vpop.f32.mrf.mxu1 }
 0xc2d   : > { %v977_v8 = vadd.f32 %v974_v58, %v712_v57 }
 0xc2f   : > { %1168 = vtanh.f32 %v977_v8  ;;  %v1094_v60 = vmul.f32 -1.442695, %v977_v8 }
 0xc31   : > { %1170 = vpow2.f32 %v1094_v60 }
 0xc35   : > { %v1169_v59 = vpop.eup %1168 }
 0xc36   : > { %1005 = vrot.lane.b32.xlu2 %v1169_v59, %s1185_s20 }
 0xc37   : > { %v1171_v61 = vpop.eup %1170 }
 0xc38   : > { %v982_v62 = vadd.f32 1.0, %v1171_v61 }
 0xc3a   : > { %1172 = vrcp.f32 %v982_v62  ;;  %v994_v4 = vand.u32 2147483648, %v982_v62  ;;  %vm988_vm3 = vweird.f32 %v982_v62  ;;  %v992_v26 = vand.u32 2147483647, %v982_v62 }
 0xc3c   : > { %v995_v6 = vor.u32 1.1754944e-38, %v994_v4  ;;  %vm993_vm1 = vcmp.eq.f32.partialorder %v992_v26, 8.507059e+37 }
 0xc40   : > { %v1173_v63 = vpop.eup %1172 }
 0xc41   : > { %v984_v0 = vmul.f32 %v1173_v63, %v982_v62  ;;  %vm989_vm0 = vweird.f32 %v1173_v63 }
 0xc42   : > { %vm990_vm4 = vmor %vm988_vm3, %vm989_vm0 }
 0xc43   : > { %v985_v1 = vsub.f32 1.0, %v984_v0 }
 0xc45   : > { %v986_v2 = vmul.f32 %v1173_v63, %v985_v1 }
 0xc47   : > { %v987_v3 = vadd.f32 %v1173_v63, %v986_v2 }
 0xc49   : > { %v991_v5 = vsel %vm990_vm4, %v1173_v63, %v987_v3 }
 0xc4a   : > { %v996_v9 = vsel %vm993_vm1, %v995_v6, %v991_v5 }
 0xc4b   : > { %v1003_v11 = vmul.f32 %v1001_v54, %v996_v9 }
 0xc90   : > { %v1006_v7 = vpop.permute.xlu2 %1005 }
 0xc91   : > { %v1008_v10 = vmul.f32 %v1006_v7, %v996_v9 }
 0xc93   : > { %1010 = vrot.lane.b32.xlu1 %v1008_v10, %s1185_s20 }
 0xd05   : > { %v1011_v12 = vpop.permute.xlu1 %1010 }
 0xd06   : > { %v1013_v15 = vadd.f32 %v1011_v12, %v1003_v11 }
 0xd08   : > { %1174 = vtanh.f32 %v1013_v15 }
 0xd0e   : > { %v1175_v18 = vpop.eup %1174 }
 0xd0f   : > { %1016 = vrot.lane.b32.xlu2 %v1175_v18, %s1185_s20 }
 0xd17   : > { %1026 = vrot.lane.b32.xlu2 %v1013_v15, %s1187_s22 }
 0xd69   : > { %v1017_v19 = vpop.permute.xlu2 %1016 }
 0xd6a   : > { %v1019_v20 = vmul.f32 %v1017_v19, %v996_v9 }
 0xd6c   : > { %1021 = vrot.lane.b32.xlu1 %v1019_v20, %s1186_s21 }
 0xd71   : > { %v1027_v21 = vpop.permute.xlu2 %1026 }
 0xd72   : > { %1029 = vst.msk [vmem:[#allocation7] sm:$0xff] %vm340_vm2, %v1027_v21 }
 0xddb   : > { %1033 = sbr.rel (%p1095_p5) target bundleno = 3560 (0xde8), region = 56 }
 0xdde   : > { %v1022_v22 = vpop.permute.xlu1 %1021 }
 0xddf   : > { %1024 = vst.msk [vmem:[#allocation6] sm:$0xff] %vm340_vm2, %v1022_v22 }
 0xde6   : > { %v1034_v23 = vld [vmem:[#allocation6] sm:$0xff] }
 0xde7   : > { %1035 = vst.msk [vmem:[%s1429_s7] sm:$0xff] %vm340_vm2, %v1034_v23 }
 0xde8 PF: > { %s17_s24 = sadd.s32 1, %s1182_s24  }
 0xde9   : > { %p14_p6 = scmp.ge.s32.totalorder %s17_s24, 6  }
 0xdeb   :  { %16 = sbr.rel (!%p14_p6) target bundleno = 1 (0x1), region = 88 }

</bundles_post_ra>
